<compile_context>
chip_gen: v7x
topology: tpu7x:2x2x1
jax: 0.10.0
libtpu: 0.0.40
codegen_flags: <defaults>
</compile_context>

<pallas_src>
import functools
import math

import jax
import jax.numpy as jnp
from jax.experimental import pallas as pl
from jax.experimental.pallas import tpu as pltpu


def _infer_vmem_limit():
    """Generation-dependent VMEM budget (~100 MiB v5e/v6e, ~54 MiB v7x)."""
    try:
        cap = pltpu.get_tpu_info().vmem_capacity_bytes
    except Exception:  # conservative fallback sized for v7x (64 MiB physical)
        cap = 64 * 1024 * 1024
    return max(32 * 1024 * 1024, min(int(cap * 0.85), 100 * 1024 * 1024))


_VMEM_LIMIT = _infer_vmem_limit()


def _round_up(x, m):
    return (x + m - 1) // m * m


def _pad2d(a, rows, cols):
    r, c = a.shape
    if r == rows and c == cols:
        return a
    return jnp.pad(a, ((0, rows - r), (0, cols - c)))


def _grid_dim(dim, align, max_tile, pad_to_align=True):
    """Pick (tile, padded_dim) with tile dividing padded_dim.

    Single full-extent block when it fits (legal even unaligned); otherwise the
    fewest `align`-multiple tiles <= max_tile, which minimises padding
    (e.g. K=768 -> tk=384 rather than padding K to 1024)."""
    base = _round_up(dim, align) if pad_to_align else dim
    if base <= max_tile:
        return base, base
    n = -(-base // max_tile)
    tile = _round_up(-(-base // n), align)
    return tile, tile * n


# ----------------------------- tiled linear --------------------------------

def _linear_kernel_single(x_ref, w_ref, b_ref, o_ref):
    # Single K block: no accumulator scratch, no pl.when phases.
    y = jnp.dot(x_ref[...].astype(jnp.bfloat16), w_ref[...].astype(jnp.bfloat16),
                preferred_element_type=jnp.float32)
    o_ref[...] = y + b_ref[...]


def _linear_kernel_acc(x_ref, w_ref, b_ref, o_ref, acc_ref):
    k = pl.program_id(2)

    @pl.when(k == 0)
    def _():
        acc_ref[...] = jnp.zeros_like(acc_ref)

    acc_ref[...] += jnp.dot(x_ref[...].astype(jnp.bfloat16),
                            w_ref[...].astype(jnp.bfloat16),
                            preferred_element_type=jnp.float32)

    @pl.when(k == pl.num_programs(2) - 1)
    def _():
        o_ref[...] = acc_ref[...] + b_ref[...]


def linear(x, w, b, *, tm_max=256, tn_max=512, tk_max=512):
    """x: [M, K] @ w: [K, N] + b: [N] -> [M, N] f32 (bf16 MXU inputs)."""
    M, K = x.shape
    N = w.shape[1]
    tm, Mp = _grid_dim(M, 8, tm_max)
    tn, Np = _grid_dim(N, 128, tn_max)              # lane-dense output tiles
    tk, Kp = _grid_dim(K, 128, tk_max, pad_to_align=False)

    xp = _pad2d(x, Mp, Kp)
    wp = _pad2d(w, Kp, Np)
    bp = _pad2d(b.reshape(1, N), 1, Np)

    n_k = Kp // tk
    if n_k == 1:
        kernel, scratch = _linear_kernel_single, []
    else:
        kernel, scratch = _linear_kernel_acc, [pltpu.VMEM((tm, tn), jnp.float32)]

    out = pl.pallas_call(
        kernel,
        out_shape=jax.ShapeDtypeStruct((Mp, Np), jnp.float32),
        grid=(Mp // tm, Np // tn, n_k),
        in_specs=[
            pl.BlockSpec((tm, tk), lambda i, j, k: (i, k)),
            pl.BlockSpec((tk, tn), lambda i, j, k: (k, j)),
            pl.BlockSpec((1, tn), lambda i, j, k: (0, j)),
        ],
        out_specs=pl.BlockSpec((tm, tn), lambda i, j, k: (i, j)),
        scratch_shapes=scratch,
        compiler_params=pltpu.CompilerParams(
            dimension_semantics=("parallel", "parallel", "arbitrary"),
            vmem_limit_bytes=_VMEM_LIMIT),
    )(xp, wp, bp)
    if (Mp, Np) != (M, N):
        out = out[:M, :N]
    return out


# ---------------- flash-style causal multi-head attention ------------------

def _flash_attn_kernel(q_ref, k_ref, v_ref, o_ref, m_sc, l_sc, acc_sc,
                       *, scale, tq, tk, seq_real):
    kv = pl.program_id(2)

    @pl.when(kv == 0)
    def _():
        m_sc[...] = jnp.full_like(m_sc, -1e30)
        l_sc[...] = jnp.zeros_like(l_sc)
        acc_sc[...] = jnp.zeros_like(acc_sc)

    q_start = pl.program_id(1) * tq
    k_start = kv * tk

    # Skip kv blocks entirely in the future of this q block (causal).
    @pl.when(k_start < q_start + tq)
    def _():
        q = (q_ref[...] * scale).astype(jnp.bfloat16)   # pre-scale q, not scores
        k = k_ref[...].astype(jnp.bfloat16)
        v = v_ref[...].astype(jnp.bfloat16)
        s = jnp.einsum("bqd,bkd->bqk", q, k, preferred_element_type=jnp.float32)

        # Causal + key-padding mask generated in-kernel (no [S,S] HBM mask).
        rows = q_start + jax.lax.broadcasted_iota(jnp.int32, (tq, tk), 0)
        cols = k_start + jax.lax.broadcasted_iota(jnp.int32, (tq, tk), 1)
        allowed = (cols <= rows) & (cols < seq_real)
        s = jnp.where(allowed[None, :, :], s, -1e30)

        m_prev = m_sc[...]
        m_new = jnp.maximum(m_prev, jnp.max(s, axis=-1, keepdims=True))
        alpha = jnp.exp(m_prev - m_new)
        p = jnp.exp(s - m_new)
        p = jnp.where(allowed[None, :, :], p, 0.0)      # robust for all-masked rows
        l_sc[...] = alpha * l_sc[...] + jnp.sum(p, axis=-1, keepdims=True)
        acc_sc[...] = alpha * acc_sc[...] + jnp.einsum(
            "bqk,bkd->bqd", p.astype(jnp.bfloat16), v,
            preferred_element_type=jnp.float32)
        m_sc[...] = m_new

    @pl.when(kv == pl.num_programs(2) - 1)
    def _():
        # exact division (not approx reciprocal) to track PyTorch numerics
        o_ref[...] = (acc_sc[...] / l_sc[...]).astype(o_ref.dtype)


def _head_chunk(bh_total, tq, tk, dh, budget_bytes):
    """Largest divisor of B*H keeping real per-step VMEM under budget: score &
    prob temporaries, double-buffered q/k/v/out blocks, online-softmax scratch."""
    per = 4 * (2 * tq * tk + 2 * tq * dh + 4 * tk * dh + 2 * tq * dh + tq * (dh + 2))
    best = 1
    for bh in range(1, min(bh_total, 64) + 1):
        if bh_total % bh == 0 and bh * per <= budget_bytes:
            best = bh
    return best


def attention(q, k, v, head_dim, *, t_max=256):
    """Causal MHA.  q/k/v: [B*H, S, Dh] -> [B*H, S, Dh] (f32)."""
    BH, S, Dh = q.shape
    scale = 1.0 / math.sqrt(head_dim)
    t, Sp = _grid_dim(S, 128, t_max, pad_to_align=False)
    if Sp != S:
        pad = ((0, 0), (0, Sp - S), (0, 0))
        q, k, v = jnp.pad(q, pad), jnp.pad(k, pad), jnp.pad(v, pad)
    bh = _head_chunk(BH, t, t, Dh, _VMEM_LIMIT // 3)

    out = pl.pallas_call(
        functools.partial(_flash_attn_kernel, scale=scale, tq=t, tk=t, seq_real=S),
        out_shape=jax.ShapeDtypeStruct((BH, Sp, Dh), jnp.float32),
        grid=(BH // bh, Sp // t, Sp // t),
        in_specs=[
            pl.BlockSpec((bh, t, Dh), lambda b, qi, ki: (b, qi, 0)),
            pl.BlockSpec((bh, t, Dh), lambda b, qi, ki: (b, ki, 0)),
            pl.BlockSpec((bh, t, Dh), lambda b, qi, ki: (b, ki, 0)),
        ],
        out_specs=pl.BlockSpec((bh, t, Dh), lambda b, qi, ki: (b, qi, 0)),
        scratch_shapes=[pltpu.VMEM((bh, t, 1), jnp.float32),
                        pltpu.VMEM((bh, t, 1), jnp.float32),
                        pltpu.VMEM((bh, t, Dh), jnp.float32)],
        compiler_params=pltpu.CompilerParams(
            dimension_semantics=("parallel", "parallel", "arbitrary"),
            vmem_limit_bytes=_VMEM_LIMIT),
    )(q, k, v)
    return out[:, :S, :] if Sp != S else out


# ------------- fused out-projection + residual + LayerNorm -----------------

def _proj_add_ln_kernel(ctx_ref, x_ref, w_ref, b_ref, g_ref, bb_ref, o_ref):
    y = jnp.dot(ctx_ref[...].astype(jnp.bfloat16), w_ref[...].astype(jnp.bfloat16),
                preferred_element_type=jnp.float32) + b_ref[...]
    z = x_ref[...] + y                                   # residual
    mean = jnp.mean(z, axis=-1, keepdims=True)
    zc = z - mean
    var = jnp.mean(zc * zc, axis=-1, keepdims=True)
    # padded (all-zero) rows produce rsqrt(1e-5); the caller slices them off.
    o_ref[...] = zc * jax.lax.rsqrt(var + 1e-5) * g_ref[...] + bb_ref[...]


def proj_add_layernorm(ctx, x, w, b, gamma, beta, *, tm_max=256):
    M, D = x.shape
    tm, Mp = _grid_dim(M, 8, tm_max)
    ctxp = _pad2d(ctx, Mp, D)
    xp = _pad2d(x, Mp, D)
    out = pl.pallas_call(
        _proj_add_ln_kernel,
        out_shape=jax.ShapeDtypeStruct((Mp, D), jnp.float32),
        grid=(Mp // tm,),
        in_specs=[
            pl.BlockSpec((tm, D), lambda i: (i, 0)),
            pl.BlockSpec((tm, D), lambda i: (i, 0)),
            pl.BlockSpec((D, D), lambda i: (0, 0)),
            pl.BlockSpec((1, D), lambda i: (0, 0)),
            pl.BlockSpec((1, D), lambda i: (0, 0)),
            pl.BlockSpec((1, D), lambda i: (0, 0)),
        ],
        out_specs=pl.BlockSpec((tm, D), lambda i: (i, 0)),
        compiler_params=pltpu.CompilerParams(
            dimension_semantics=("parallel",),
            vmem_limit_bytes=_VMEM_LIMIT),
    )(ctxp, xp, w, b.reshape(1, D), gamma.reshape(1, D), beta.reshape(1, D))
    return out[:M] if Mp != M else out


# -------- fused FFN (+ReLU) + residual + LayerNorm, H-tiled accumulation ----

def _ffn_add_ln_kernel(x_ref, w1_ref, b1_ref, w2_ref, b2_ref, g_ref, bb_ref,
                       o_ref, acc_ref):
    h_idx = pl.program_id(1)

    @pl.when(h_idx == 0)
    def _():
        acc_ref[...] = jnp.zeros_like(acc_ref)

    x = x_ref[...]
    h = jnp.dot(x.astype(jnp.bfloat16), w1_ref[...].astype(jnp.bfloat16),
                preferred_element_type=jnp.float32) + b1_ref[...]
    h = jnp.maximum(h, 0.0)                               # ReLU
    acc_ref[...] += jnp.dot(h.astype(jnp.bfloat16), w2_ref[...].astype(jnp.bfloat16),
                            preferred_element_type=jnp.float32)

    @pl.when(h_idx == pl.num_programs(1) - 1)
    def _():
        z = x + acc_ref[...] + b2_ref[...]                 # residual + bias
        mean = jnp.mean(z, axis=-1, keepdims=True)
        zc = z - mean
        var = jnp.mean(zc * zc, axis=-1, keepdims=True)
        o_ref[...] = zc * jax.lax.rsqrt(var + 1e-5) * g_ref[...] + bb_ref[...]


def ffn_add_layernorm(x, w1, b1, w2, b2, gamma, beta, *, tm_max=256, th_max=512):
    M, D = x.shape
    H = w1.shape[1]
    tm, Mp = _grid_dim(M, 8, tm_max)
    th, Hp = _grid_dim(H, 128, th_max, pad_to_align=False)
    xp = _pad2d(x, Mp, D)
    w1p = _pad2d(w1, D, Hp)
    b1p = _pad2d(b1.reshape(1, H), 1, Hp)
    w2p = _pad2d(w2, Hp, D)
    out = pl.pallas_call(
        _ffn_add_ln_kernel,
        out_shape=jax.ShapeDtypeStruct((Mp, D), jnp.float32),
        grid=(Mp // tm, Hp // th),
        in_specs=[
            pl.BlockSpec((tm, D), lambda i, j: (i, 0)),
            pl.BlockSpec((D, th), lambda i, j: (0, j)),
            pl.BlockSpec((1, th), lambda i, j: (0, j)),
            pl.BlockSpec((th, D), lambda i, j: (j, 0)),
            pl.BlockSpec((1, D), lambda i, j: (0, 0)),
            pl.BlockSpec((1, D), lambda i, j: (0, 0)),
            pl.BlockSpec((1, D), lambda i, j: (0, 0)),
        ],
        out_specs=pl.BlockSpec((tm, D), lambda i, j: (i, 0)),
        scratch_shapes=[pltpu.VMEM((tm, D), jnp.float32)],
        compiler_params=pltpu.CompilerParams(
            dimension_semantics=("parallel", "arbitrary"),
            vmem_limit_bytes=_VMEM_LIMIT),
    )(xp, w1p, b1p, w2p, b2.reshape(1, D), gamma.reshape(1, D), beta.reshape(1, D))
    return out[:M] if Mp != M else out


# ------------------------------ model wrapper -------------------------------

def make_positional_encoding(seq_len, d_model):
    position = jnp.arange(seq_len, dtype=jnp.float32)[:, None]
    div_term = jnp.exp(
        jnp.arange(0, d_model, 2, dtype=jnp.float32) * (-math.log(10000.0) / d_model))
    pe = jnp.zeros((seq_len, d_model), dtype=jnp.float32)
    pe = pe.at[:, 0::2].set(jnp.sin(position * div_term))
    pe = pe.at[:, 1::2].set(jnp.cos(position * div_term))
    return pe  # [S, D]


def init_params(key, ntoken, d_model, nhead, d_hid, nlayers):
    def u(key, shape, scale=0.1):
        return jax.random.uniform(key, shape, jnp.float32, -scale, scale)

    keys = iter(jax.random.split(key, 8 * nlayers + 4))
    params = {
        "embedding": u(next(keys), (ntoken, d_model)),        # nn.Embedding weight
        "final_w": u(next(keys), (d_model, ntoken)),           # [in, out]
        "final_b": jnp.zeros((ntoken,), jnp.float32),
        "layers": [],
    }
    for _ in range(nlayers):
        lp = {
            "w_qkv": u(next(keys), (d_model, 3 * d_model)),    # in_proj, [in, out]
            "b_qkv": u(next(keys), (3 * d_model,), 0.02),
            "w_o": u(next(keys), (d_model, d_model)),          # out_proj
            "b_o": u(next(keys), (d_model,), 0.02),
            "w_ff1": u(next(keys), (d_model, d_hid)),
            "b_ff1": u(next(keys), (d_hid,), 0.02),
            "w_ff2": u(next(keys), (d_hid, d_model)),
            "b_ff2": u(next(keys), (d_model,), 0.02),
            "ln1_g": jnp.ones((d_model,), jnp.float32),
            "ln1_b": jnp.zeros((d_model,), jnp.float32),
            "ln2_g": jnp.ones((d_model,), jnp.float32),
            "ln2_b": jnp.zeros((d_model,), jnp.float32),
        }
        params["layers"].append(lp)
    return params


def encoder_layer(x2d, lp, seq, batch, d_model, nhead):
    head_dim = d_model // nhead

    # --- self-attention block (post-LN) ---
    qkv = linear(x2d, lp["w_qkv"], lp["b_qkv"])                  # [S*B, 3D]
    q, k, v = jnp.split(qkv, 3, axis=-1)

    def to_heads(t):   # [S*B, D] -> [B*H, S, Dh]   (XLA glue)
        t = t.reshape(seq, batch, nhead, head_dim)
        return jnp.transpose(t, (1, 2, 0, 3)).reshape(batch * nhead, seq, head_dim)

    def from_heads(t):  # [B*H, S, Dh] -> [S*B, D]  (XLA glue)
        t = t.reshape(batch, nhead, seq, head_dim)
        return jnp.transpose(t, (2, 0, 1, 3)).reshape(seq * batch, d_model)

    ctx = attention(to_heads(q), to_heads(k), to_heads(v), head_dim)
    x2d = proj_add_layernorm(from_heads(ctx), x2d, lp["w_o"], lp["b_o"],
                             lp["ln1_g"], lp["ln1_b"])

    # --- feed-forward block (post-LN), fused and H-tiled ---
    x2d = ffn_add_layernorm(x2d, lp["w_ff1"], lp["b_ff1"],
                            lp["w_ff2"], lp["b_ff2"],
                            lp["ln2_g"], lp["ln2_b"])
    return x2d


def transformer_model(params, src, d_model, nhead):
    """src: int32 [seq_len, batch] -> logits [seq_len, batch, ntoken]."""
    seq, batch = src.shape
    ntoken = params["embedding"].shape[0]

    # embedding gather + scale + positional encoding: left to XLA so the
    # elementwise ops fuse with the gather (no extra HBM round trip).
    emb = jnp.take(params["embedding"], src, axis=0)             # [S, B, D]
    pe = make_positional_encoding(seq, d_model)                  # [S, D]
    x2d = (emb * math.sqrt(d_model) + pe[:, None, :]).reshape(seq * batch, d_model)

    for lp in params["layers"]:
        x2d = encoder_layer(x2d, lp, seq, batch, d_model, nhead)

    logits = linear(x2d, params["final_w"], params["final_b"])   # [S*B, ntoken]
    return logits.reshape(seq, batch, ntoken)


if __name__ == "__main__":
    ntoken, d_model, nhead, d_hid, nlayers = 50, 32, 4, 64, 2
    seq_len, batch = 8, 2

    key = jax.random.PRNGKey(0)
    kp, ks = jax.random.split(key)
    params = init_params(kp, ntoken, d_model, nhead, d_hid, nlayers)
    src = jax.random.randint(ks, (seq_len, batch), 0, ntoken, dtype=jnp.int32)

    fwd = jax.jit(functools.partial(transformer_model, d_model=d_model, nhead=nhead))
    out = jax.block_until_ready(fwd(params, src))
    assert out.shape == (seq_len, batch, ntoken)
    assert bool(jnp.all(jnp.isfinite(out)))
    print("KERNEL_OK")
</pallas_src>

<mosaic_0001>
module attributes {stable_mosaic.version = 11 : i64} {
  func.func @_linear_kernel_single(%arg0: i32, %arg1: i32, %arg2: i32, %arg3: memref<16x32xf32, #tpu.memory_space<vmem>>, %arg4: memref<32x128xf32, #tpu.memory_space<vmem>>, %arg5: memref<1x128xf32, #tpu.memory_space<vmem>>, %arg6: memref<16x128xf32, #tpu.memory_space<vmem>>) attributes {dimension_semantics = [#tpu.dimension_semantics<parallel>, #tpu.dimension_semantics<parallel>, #tpu.dimension_semantics<arbitrary>], iteration_bounds = array<i64: 1, 1, 1>, scalar_prefetch = 0 : i64, scratch_operands = 0 : i64, tpu.core_type = #tpu.core_type<tc>, window_params = [{transform_indices = @transform_0, window_bounds = array<i64: 16, 32>}, {transform_indices = @transform_1, window_bounds = array<i64: 32, 128>}, {transform_indices = @transform_2, window_bounds = array<i64: 1, 128>}, {transform_indices = @transform_3, window_bounds = array<i64: 16, 128>}]} {
    %c0 = arith.constant 0 : index
    %c0_0 = arith.constant 0 : index
    %0 = vector.load %arg3[%c0, %c0_0] : memref<16x32xf32, #tpu.memory_space<vmem>>, vector<16x32xf32>
    %1 = arith.truncf %0 : vector<16x32xf32> to vector<16x32xbf16>
    %c0_1 = arith.constant 0 : index
    %c0_2 = arith.constant 0 : index
    %2 = vector.load %arg4[%c0_1, %c0_2] : memref<32x128xf32, #tpu.memory_space<vmem>>, vector<32x128xf32>
    %3 = arith.truncf %2 : vector<32x128xf32> to vector<32x128xbf16>
    %cst = arith.constant dense<0.000000e+00> : vector<16x128xf32>
    %4 = tpu.matmul %1, %3, %cst {dimension_numbers = #tpu.dot_dimension_numbers<[1], [0], [0], [1], [0, 0, 1, 1], [], []>} : vector<16x32xbf16>, vector<32x128xbf16>, vector<16x128xf32> -> vector<16x128xf32>
    %c0_3 = arith.constant 0 : index
    %c0_4 = arith.constant 0 : index
    %5 = vector.load %arg5[%c0_3, %c0_4] : memref<1x128xf32, #tpu.memory_space<vmem>>, vector<1x128xf32>
    %6 = vector.broadcast %5 : vector<1x128xf32> to vector<16x128xf32>
    %7 = arith.addf %4, %6 : vector<16x128xf32>
    %c0_5 = arith.constant 0 : index
    %c0_6 = arith.constant 0 : index
    %8 = vector.load %arg6[%c0_5, %c0_6] : memref<16x128xf32, #tpu.memory_space<vmem>>, vector<16x128xf32>
    tpu.vector_store %arg6[%c0_5, %c0_6], %7 {strides = array<i32>} : memref<16x128xf32, #tpu.memory_space<vmem>>, vector<16x128xf32>,
    return
  }
  func.func @transform_0(%arg0: i32, %arg1: i32, %arg2: i32) -> (i32, i32) {
    %c0_i32 = arith.constant 0 : i32
    return %arg0, %arg2 : i32, i32
  }
  func.func @transform_1(%arg0: i32, %arg1: i32, %arg2: i32) -> (i32, i32) {
    %c0_i32 = arith.constant 0 : i32
    return %arg2, %arg1 : i32, i32
  }
  func.func @transform_2(%arg0: i32, %arg1: i32, %arg2: i32) -> (i32, i32) {
    %c0_i32 = arith.constant 0 : i32
    %c0_i32_0 = arith.constant 0 : i32
    return %c0_i32, %arg1 : i32, i32
  }
  func.func @transform_3(%arg0: i32, %arg1: i32, %arg2: i32) -> (i32, i32) {
    %c0_i32 = arith.constant 0 : i32
    return %arg0, %arg1 : i32, i32
  }
}

module attributes {stable_mosaic.version = 11 : i64} {
  func.func @_proj_add_ln_kernel(%arg0: i32, %arg1: memref<16x32xf32, #tpu.memory_space<vmem>>, %arg2: memref<16x32xf32, #tpu.memory_space<vmem>>, %arg3: memref<32x32xf32, #tpu.memory_space<vmem>>, %arg4: memref<1x32xf32, #tpu.memory_space<vmem>>, %arg5: memref<1x32xf32, #tpu.memory_space<vmem>>, %arg6: memref<1x32xf32, #tpu.memory_space<vmem>>, %arg7: memref<16x32xf32, #tpu.memory_space<vmem>>) attributes {dimension_semantics = [#tpu.dimension_semantics<parallel>], iteration_bounds = array<i64: 1>, scalar_prefetch = 0 : i64, scratch_operands = 0 : i64, tpu.core_type = #tpu.core_type<tc>, window_params = [{transform_indices = @transform_0, window_bounds = array<i64: 16, 32>}, {transform_indices = @transform_1, window_bounds = array<i64: 16, 32>}, {pipeline_mode = #tpu.pipeline_mode<synchronous>, transform_indices = @transform_2, window_bounds = array<i64: 32, 32>}, {pipeline_mode = #tpu.pipeline_mode<synchronous>, transform_indices = @transform_3, window_bounds = array<i64: 1, 32>}, {pipeline_mode = #tpu.pipeline_mode<synchronous>, transform_indices = @transform_4, window_bounds = array<i64: 1, 32>}, {pipeline_mode = #tpu.pipeline_mode<synchronous>, transform_indices = @transform_5, window_bounds = array<i64: 1, 32>}, {transform_indices = @transform_6, window_bounds = array<i64: 16, 32>}]} {
    %c0 = arith.constant 0 : index
    %c0_0 = arith.constant 0 : index
    %0 = vector.load %arg1[%c0, %c0_0] : memref<16x32xf32, #tpu.memory_space<vmem>>, vector<16x32xf32>
    %1 = arith.truncf %0 : vector<16x32xf32> to vector<16x32xbf16>
    %c0_1 = arith.constant 0 : index
    %c0_2 = arith.constant 0 : index
    %2 = vector.load %arg3[%c0_1, %c0_2] : memref<32x32xf32, #tpu.memory_space<vmem>>, vector<32x32xf32>
    %3 = arith.truncf %2 : vector<32x32xf32> to vector<32x32xbf16>
    %cst = arith.constant dense<0.000000e+00> : vector<16x32xf32>
    %4 = tpu.matmul %1, %3, %cst {dimension_numbers = #tpu.dot_dimension_numbers<[1], [0], [0], [1], [0, 0, 1, 1], [], []>} : vector<16x32xbf16>, vector<32x32xbf16>, vector<16x32xf32> -> vector<16x32xf32>
    %c0_3 = arith.constant 0 : index
    %c0_4 = arith.constant 0 : index
    %5 = vector.load %arg4[%c0_3, %c0_4] : memref<1x32xf32, #tpu.memory_space<vmem>>, vector<1x32xf32>
    %6 = vector.broadcast %5 : vector<1x32xf32> to vector<16x32xf32>
    %7 = arith.addf %4, %6 : vector<16x32xf32>
    %c0_5 = arith.constant 0 : index
    %c0_6 = arith.constant 0 : index
    %8 = vector.load %arg2[%c0_5, %c0_6] : memref<16x32xf32, #tpu.memory_space<vmem>>, vector<16x32xf32>
    %9 = arith.addf %8, %7 : vector<16x32xf32>
    %cst_7 = arith.constant dense<0.000000e+00> : vector<16xf32>
    %10 = vector.multi_reduction <add>, %9, %cst_7 [1] : vector<16x32xf32> to vector<16xf32>
    %11 = vector.shape_cast %10 : vector<16xf32> to vector<16x1xf32>
    %cst_8 = arith.constant 3.200000e+01 : f32
    %12 = vector.broadcast %cst_8 : f32 to vector<16x1xf32>
    %13 = arith.divf %11, %12 : vector<16x1xf32>
    %14 = vector.broadcast %13 : vector<16x1xf32> to vector<16x32xf32>
    %15 = arith.subf %9, %14 : vector<16x32xf32>
    %16 = arith.mulf %15, %15 : vector<16x32xf32>
    %cst_9 = arith.constant dense<0.000000e+00> : vector<16xf32>
    %17 = vector.multi_reduction <add>, %16, %cst_9 [1] : vector<16x32xf32> to vector<16xf32>
    %18 = vector.shape_cast %17 : vector<16xf32> to vector<16x1xf32>
    %cst_10 = arith.constant 3.200000e+01 : f32
    %19 = vector.broadcast %cst_10 : f32 to vector<16x1xf32>
    %20 = arith.divf %18, %19 : vector<16x1xf32>
    %cst_11 = arith.constant 9.99999974E-6 : f32
    %21 = vector.broadcast %cst_11 : f32 to vector<16x1xf32>
    %22 = arith.addf %20, %21 : vector<16x1xf32>
    %23 = math.rsqrt %22 : vector<16x1xf32>
    %24 = vector.broadcast %23 : vector<16x1xf32> to vector<16x32xf32>
    %25 = arith.mulf %15, %24 : vector<16x32xf32>
    %c0_12 = arith.constant 0 : index
    %c0_13 = arith.constant 0 : index
    %26 = vector.load %arg5[%c0_12, %c0_13] : memref<1x32xf32, #tpu.memory_space<vmem>>, vector<1x32xf32>
    %27 = vector.broadcast %26 : vector<1x32xf32> to vector<16x32xf32>
    %28 = arith.mulf %25, %27 : vector<16x32xf32>
    %c0_14 = arith.constant 0 : index
    %c0_15 = arith.constant 0 : index
    %29 = vector.load %arg6[%c0_14, %c0_15] : memref<1x32xf32, #tpu.memory_space<vmem>>, vector<1x32xf32>
    %30 = vector.broadcast %29 : vector<1x32xf32> to vector<16x32xf32>
    %31 = arith.addf %28, %30 : vector<16x32xf32>
    %c0_16 = arith.constant 0 : index
    %c0_17 = arith.constant 0 : index
    %32 = vector.load %arg7[%c0_16, %c0_17] : memref<16x32xf32, #tpu.memory_space<vmem>>, vector<16x32xf32>
    tpu.vector_store %arg7[%c0_16, %c0_17], %31 {strides = array<i32>} : memref<16x32xf32, #tpu.memory_space<vmem>>, vector<16x32xf32>,
    return
  }
  func.func @transform_0(%arg0: i32) -> (i32, i32) {
    %c0_i32 = arith.constant 0 : i32
    %c0_i32_0 = arith.constant 0 : i32
    return %arg0, %c0_i32 : i32, i32
  }
  func.func @transform_1(%arg0: i32) -> (i32, i32) {
    %c0_i32 = arith.constant 0 : i32
    %c0_i32_0 = arith.constant 0 : i32
    return %arg0, %c0_i32 : i32, i32
  }
  func.func @transform_2(%arg0: i32) -> (i32, i32) {
    %c0_i32 = arith.constant 0 : i32
    %c0_i32_0 = arith.constant 0 : i32
    %c0_i32_1 = arith.constant 0 : i32
    return %c0_i32, %c0_i32_0 : i32, i32
  }
  func.func @transform_3(%arg0: i32) -> (i32, i32) {
    %c0_i32 = arith.constant 0 : i32
    %c0_i32_0 = arith.constant 0 : i32
    %c0_i32_1 = arith.constant 0 : i32
    return %c0_i32, %c0_i32_0 : i32, i32
  }
  func.func @transform_4(%arg0: i32) -> (i32, i32) {
    %c0_i32 = arith.constant 0 : i32
    %c0_i32_0 = arith.constant 0 : i32
    %c0_i32_1 = arith.constant 0 : i32
    return %c0_i32, %c0_i32_0 : i32, i32
  }
  func.func @transform_5(%arg0: i32) -> (i32, i32) {
    %c0_i32 = arith.constant 0 : i32
    %c0_i32_0 = arith.constant 0 : i32
    %c0_i32_1 = arith.constant 0 : i32
    return %c0_i32, %c0_i32_0 : i32, i32
  }
  func.func @transform_6(%arg0: i32) -> (i32, i32) {
    %c0_i32 = arith.constant 0 : i32
    %c0_i32_0 = arith.constant 0 : i32
    return %arg0, %c0_i32 : i32, i32
  }
}

module attributes {stable_mosaic.version = 11 : i64} {
  func.func @_flash_attn_kernel(%arg0: i32, %arg1: i32, %arg2: i32, %arg3: memref<8x8x8xf32, #tpu.memory_space<vmem>>, %arg4: memref<8x8x8xf32, #tpu.memory_space<vmem>>, %arg5: memref<8x8x8xf32, #tpu.memory_space<vmem>>, %arg6: memref<8x8x8xf32, #tpu.memory_space<vmem>>, %arg7: memref<8x8x1xf32, #tpu.memory_space<vmem>>, %arg8: memref<8x8x1xf32, #tpu.memory_space<vmem>>, %arg9: memref<8x8x8xf32, #tpu.memory_space<vmem>>) attributes {dimension_semantics = [#tpu.dimension_semantics<parallel>, #tpu.dimension_semantics<parallel>, #tpu.dimension_semantics<arbitrary>], iteration_bounds = array<i64: 1, 1, 1>, scalar_prefetch = 0 : i64, scratch_operands = 3 : i64, tpu.core_type = #tpu.core_type<tc>, window_params = [{transform_indices = @transform_0, window_bounds = array<i64: 8, 8, 8>}, {transform_indices = @transform_1, window_bounds = array<i64: 8, 8, 8>}, {transform_indices = @transform_2, window_bounds = array<i64: 8, 8, 8>}, {transform_indices = @transform_3, window_bounds = array<i64: 8, 8, 8>}]} {
    %c0_i32 = arith.constant 0 : i32
    %0 = arith.cmpi eq, %arg2, %c0_i32 : i32
    %1 = arith.extui %0 : i1 to i32
    %c0_i32_0 = arith.constant 0 : i32
    %2 = arith.cmpi ne, %1, %c0_i32_0 : i32
    scf.if %2 {
      %cst = arith.constant -1.000000e+30 : f32
      %12 = vector.broadcast %cst : f32 to vector<8x8x1xf32>
      %c0 = arith.constant 0 : index
      %c0_6 = arith.constant 0 : index
      %c0_7 = arith.constant 0 : index
      %13 = vector.load %arg7[%c0, %c0_6, %c0_7] : memref<8x8x1xf32, #tpu.memory_space<vmem>>, vector<8x8x1xf32>
      tpu.vector_store %arg7[%c0, %c0_6, %c0_7], %12 {strides = array<i32>} : memref<8x8x1xf32, #tpu.memory_space<vmem>>, vector<8x8x1xf32>,
      %cst_8 = arith.constant 0.000000e+00 : f32
      %14 = vector.broadcast %cst_8 : f32 to vector<8x8x1xf32>
      %c0_9 = arith.constant 0 : index
      %c0_10 = arith.constant 0 : index
      %c0_11 = arith.constant 0 : index
      %15 = vector.load %arg8[%c0_9, %c0_10, %c0_11] : memref<8x8x1xf32, #tpu.memory_space<vmem>>, vector<8x8x1xf32>
      tpu.vector_store %arg8[%c0_9, %c0_10, %c0_11], %14 {strides = array<i32>} : memref<8x8x1xf32, #tpu.memory_space<vmem>>, vector<8x8x1xf32>,
      %cst_12 = arith.constant 0.000000e+00 : f32
      %16 = vector.broadcast %cst_12 : f32 to vector<8x8x8xf32>
      %c0_13 = arith.constant 0 : index
      %c0_14 = arith.constant 0 : index
      %c0_15 = arith.constant 0 : index
      %17 = vector.load %arg9[%c0_13, %c0_14, %c0_15] : memref<8x8x8xf32, #tpu.memory_space<vmem>>, vector<8x8x8xf32>
      tpu.vector_store %arg9[%c0_13, %c0_14, %c0_15], %16 {strides = array<i32>} : memref<8x8x8xf32, #tpu.memory_space<vmem>>, vector<8x8x8xf32>,
    } else {
    }
    %c8_i32 = arith.constant 8 : i32
    %3 = arith.muli %arg1, %c8_i32 : i32
    %c8_i32_1 = arith.constant 8 : i32
    %4 = arith.muli %arg2, %c8_i32_1 : i32
    %c8_i32_2 = arith.constant 8 : i32
    %5 = arith.addi %3, %c8_i32_2 : i32
    %6 = arith.cmpi slt, %4, %5 : i32
    %7 = arith.extui %6 : i1 to i32
    %c0_i32_3 = arith.constant 0 : i32
    %8 = arith.cmpi ne, %7, %c0_i32_3 : i32
    scf.if %8 {
      %c0 = arith.constant 0 : index
      %c0_6 = arith.constant 0 : index
      %c0_7 = arith.constant 0 : index
      %12 = vector.load %arg3[%c0, %c0_6, %c0_7] : memref<8x8x8xf32, #tpu.memory_space<vmem>>, vector<8x8x8xf32>
      %cst = arith.constant 0.353553385 : f32
      %13 = vector.broadcast %cst : f32 to vector<8x8x8xf32>
      %14 = arith.mulf %12, %13 : vector<8x8x8xf32>
      %15 = arith.truncf %14 : vector<8x8x8xf32> to vector<8x8x8xbf16>
      %c0_8 = arith.constant 0 : index
      %c0_9 = arith.constant 0 : index
      %c0_10 = arith.constant 0 : index
      %16 = vector.load %arg4[%c0_8, %c0_9, %c0_10] : memref<8x8x8xf32, #tpu.memory_space<vmem>>, vector<8x8x8xf32>
      %17 = arith.truncf %16 : vector<8x8x8xf32> to vector<8x8x8xbf16>
      %c0_11 = arith.constant 0 : index
      %c0_12 = arith.constant 0 : index
      %c0_13 = arith.constant 0 : index
      %18 = vector.load %arg5[%c0_11, %c0_12, %c0_13] : memref<8x8x8xf32, #tpu.memory_space<vmem>>, vector<8x8x8xf32>
      %19 = arith.truncf %18 : vector<8x8x8xf32> to vector<8x8x8xbf16>
      "tpu.trace_start"() <{level = 10 : i32, message = "bqd,bkd->bqk"}> : () -> ()
      %cst_14 = arith.constant dense<0.000000e+00> : vector<8x8x8xf32>
      %20 = tpu.matmul %15, %17, %cst_14 {dimension_numbers = #tpu.dot_dimension_numbers<[2], [2], [1], [1], [0, 0, 0, 1, 1, 1], [0], [0]>} : vector<8x8x8xbf16>, vector<8x8x8xbf16>, vector<8x8x8xf32> -> vector<8x8x8xf32>
      "tpu.trace_stop"() : () -> ()
      %21 = tpu.iota {dimensions = array<i32: 0>} : vector<8x8xi32>
      %22 = vector.broadcast %3 : i32 to vector<8x8xi32>
      %23 = arith.addi %22, %21 : vector<8x8xi32>
      %24 = tpu.iota {dimensions = array<i32: 1>} : vector<8x8xi32>
      %25 = vector.broadcast %4 : i32 to vector<8x8xi32>
      %26 = arith.addi %25, %24 : vector<8x8xi32>
      %27 = arith.cmpi sle, %26, %23 : vector<8x8xi32>
      %c8_i32_15 = arith.constant 8 : i32
      %28 = vector.broadcast %c8_i32_15 : i32 to vector<8x8xi32>
      %29 = arith.cmpi slt, %26, %28 : vector<8x8xi32>
      %30 = arith.andi %27, %29 : vector<8x8xi1>
      %31 = vector.shape_cast %30 : vector<8x8xi1> to vector<1x8x8xi1>
      %cst_16 = arith.constant -1.000000e+30 : f32
      %32 = vector.shape_cast %31 : vector<1x8x8xi1> to vector<1x8x8xi1>
      %33 = vector.broadcast %32 : vector<1x8x8xi1> to vector<8x8x8xi1>
      %34 = vector.broadcast %cst_16 : f32 to vector<8x8x8xf32>
      %35 = arith.select %33, %20, %34 : vector<8x8x8xi1>, vector<8x8x8xf32>
      %c0_17 = arith.constant 0 : index
      %c0_18 = arith.constant 0 : index
      %c0_19 = arith.constant 0 : index
      %36 = vector.load %arg7[%c0_17, %c0_18, %c0_19] : memref<8x8x1xf32, #tpu.memory_space<vmem>>, vector<8x8x1xf32>
      %cst_20 = arith.constant dense<0xFF800000> : vector<8x8xf32>
      %37 = vector.multi_reduction <maximumf>, %35, %cst_20 [2] : vector<8x8x8xf32> to vector<8x8xf32>
      %38 = vector.shape_cast %37 : vector<8x8xf32> to vector<8x8x1xf32>
      %39 = arith.maximumf %36, %38 : vector<8x8x1xf32>
      %40 = arith.subf %36, %39 : vector<8x8x1xf32>
      %41 = math.exp %40 : vector<8x8x1xf32>
      %42 = vector.broadcast %39 : vector<8x8x1xf32> to vector<8x8x8xf32>
      %43 = arith.subf %35, %42 : vector<8x8x8xf32>
      %44 = math.exp %43 : vector<8x8x8xf32>
      %45 = vector.shape_cast %30 : vector<8x8xi1> to vector<1x8x8xi1>
      %cst_21 = arith.constant 0.000000e+00 : f32
      %46 = vector.shape_cast %45 : vector<1x8x8xi1> to vector<1x8x8xi1>
      %47 = vector.broadcast %46 : vector<1x8x8xi1> to vector<8x8x8xi1>
      %48 = vector.broadcast %cst_21 : f32 to vector<8x8x8xf32>
      %49 = arith.select %47, %44, %48 : vector<8x8x8xi1>, vector<8x8x8xf32>
      %c0_22 = arith.constant 0 : index
      %c0_23 = arith.constant 0 : index
      %c0_24 = arith.constant 0 : index
      %50 = vector.load %arg8[%c0_22, %c0_23, %c0_24] : memref<8x8x1xf32, #tpu.memory_space<vmem>>, vector<8x8x1xf32>
      %51 = arith.mulf %41, %50 : vector<8x8x1xf32>
      %cst_25 = arith.constant dense<0.000000e+00> : vector<8x8xf32>
      %52 = vector.multi_reduction <add>, %49, %cst_25 [2] : vector<8x8x8xf32> to vector<8x8xf32>
      %53 = vector.shape_cast %52 : vector<8x8xf32> to vector<8x8x1xf32>
      %54 = arith.addf %51, %53 : vector<8x8x1xf32>
      %c0_26 = arith.constant 0 : index
      %c0_27 = arith.constant 0 : index
      %c0_28 = arith.constant 0 : index
      %55 = vector.load %arg8[%c0_26, %c0_27, %c0_28] : memref<8x8x1xf32, #tpu.memory_space<vmem>>, vector<8x8x1xf32>
      tpu.vector_store %arg8[%c0_26, %c0_27, %c0_28], %54 {strides = array<i32>} : memref<8x8x1xf32, #tpu.memory_space<vmem>>, vector<8x8x1xf32>,
      %c0_29 = arith.constant 0 : index
      %c0_30 = arith.constant 0 : index
      %c0_31 = arith.constant 0 : index
      %56 = vector.load %arg9[%c0_29, %c0_30, %c0_31] : memref<8x8x8xf32, #tpu.memory_space<vmem>>, vector<8x8x8xf32>
      %57 = vector.broadcast %41 : vector<8x8x1xf32> to vector<8x8x8xf32>
      %58 = arith.mulf %57, %56 : vector<8x8x8xf32>
      %59 = arith.truncf %49 : vector<8x8x8xf32> to vector<8x8x8xbf16>
      "tpu.trace_start"() <{level = 10 : i32, message = "bqk,bkd->bqd"}> : () -> ()
      %cst_32 = arith.constant dense<0.000000e+00> : vector<8x8x8xf32>
      %60 = tpu.matmul %59, %19, %cst_32 {dimension_numbers = #tpu.dot_dimension_numbers<[2], [1], [1], [2], [0, 0, 0, 1, 1, 2], [0], [0]>} : vector<8x8x8xbf16>, vector<8x8x8xbf16>, vector<8x8x8xf32> -> vector<8x8x8xf32>
      "tpu.trace_stop"() : () -> ()
      %61 = arith.addf %58, %60 : vector<8x8x8xf32>
      %c0_33 = arith.constant 0 : index
      %c0_34 = arith.constant 0 : index
      %c0_35 = arith.constant 0 : index
      %62 = vector.load %arg9[%c0_33, %c0_34, %c0_35] : memref<8x8x8xf32, #tpu.memory_space<vmem>>, vector<8x8x8xf32>
      tpu.vector_store %arg9[%c0_33, %c0_34, %c0_35], %61 {strides = array<i32>} : memref<8x8x8xf32, #tpu.memory_space<vmem>>, vector<8x8x8xf32>,
      %c0_36 = arith.constant 0 : index
      %c0_37 = arith.constant 0 : index
      %c0_38 = arith.constant 0 : index
      %63 = vector.load %arg7[%c0_36, %c0_37, %c0_38] : memref<8x8x1xf32, #tpu.memory_space<vmem>>, vector<8x8x1xf32>
      tpu.vector_store %arg7[%c0_36, %c0_37, %c0_38], %39 {strides = array<i32>} : memref<8x8x1xf32, #tpu.memory_space<vmem>>, vector<8x8x1xf32>,
    } else {
    }
    %c0_i32_4 = arith.constant 0 : i32
    %9 = arith.cmpi eq, %arg2, %c0_i32_4 : i32
    %10 = arith.extui %9 : i1 to i32
    %c0_i32_5 = arith.constant 0 : i32
    %11 = arith.cmpi ne, %10, %c0_i32_5 : i32
    scf.if %11 {
      %c0 = arith.constant 0 : index
      %c0_6 = arith.constant 0 : index
      %c0_7 = arith.constant 0 : index
      %12 = vector.load %arg9[%c0, %c0_6, %c0_7] : memref<8x8x8xf32, #tpu.memory_space<vmem>>, vector<8x8x8xf32>
      %c0_8 = arith.constant 0 : index
      %c0_9 = arith.constant 0 : index
      %c0_10 = arith.constant 0 : index
      %13 = vector.load %arg8[%c0_8, %c0_9, %c0_10] : memref<8x8x1xf32, #tpu.memory_space<vmem>>, vector<8x8x1xf32>
      %14 = vector.broadcast %13 : vector<8x8x1xf32> to vector<8x8x8xf32>
      %15 = arith.divf %12, %14 : vector<8x8x8xf32>
      %c0_11 = arith.constant 0 : index
      %c0_12 = arith.constant 0 : index
      %c0_13 = arith.constant 0 : index
      %16 = vector.load %arg6[%c0_11, %c0_12, %c0_13] : memref<8x8x8xf32, #tpu.memory_space<vmem>>, vector<8x8x8xf32>
      tpu.vector_store %arg6[%c0_11, %c0_12, %c0_13], %15 {strides = array<i32>} : memref<8x8x8xf32, #tpu.memory_space<vmem>>, vector<8x8x8xf32>,
    } else {
    }
    return
  }
  func.func @transform_0(%arg0: i32, %arg1: i32, %arg2: i32) -> (i32, i32, i32) {
    %c0_i32 = arith.constant 0 : i32
    %c0_i32_0 = arith.constant 0 : i32
    return %arg0, %arg1, %c0_i32 : i32, i32, i32
  }
  func.func @transform_1(%arg0: i32, %arg1: i32, %arg2: i32) -> (i32, i32, i32) {
    %c0_i32 = arith.constant 0 : i32
    %c0_i32_0 = arith.constant 0 : i32
    return %arg0, %arg2, %c0_i32 : i32, i32, i32
  }
  func.func @transform_2(%arg0: i32, %arg1: i32, %arg2: i32) -> (i32, i32, i32) {
    %c0_i32 = arith.constant 0 : i32
    %c0_i32_0 = arith.constant 0 : i32
    return %arg0, %arg2, %c0_i32 : i32, i32, i32
  }
  func.func @transform_3(%arg0: i32, %arg1: i32, %arg2: i32) -> (i32, i32, i32) {
    %c0_i32 = arith.constant 0 : i32
    %c0_i32_0 = arith.constant 0 : i32
    return %arg0, %arg1, %c0_i32 : i32, i32, i32
  }
}

module attributes {stable_mosaic.version = 11 : i64} {
  func.func @_ffn_add_ln_kernel(%arg0: i32, %arg1: i32, %arg2: memref<16x32xf32, #tpu.memory_space<vmem>>, %arg3: memref<32x64xf32, #tpu.memory_space<vmem>>, %arg4: memref<1x64xf32, #tpu.memory_space<vmem>>, %arg5: memref<64x32xf32, #tpu.memory_space<vmem>>, %arg6: memref<1x32xf32, #tpu.memory_space<vmem>>, %arg7: memref<1x32xf32, #tpu.memory_space<vmem>>, %arg8: memref<1x32xf32, #tpu.memory_space<vmem>>, %arg9: memref<16x32xf32, #tpu.memory_space<vmem>>, %arg10: memref<16x32xf32, #tpu.memory_space<vmem>>) attributes {dimension_semantics = [#tpu.dimension_semantics<parallel>, #tpu.dimension_semantics<arbitrary>], iteration_bounds = array<i64: 1, 1>, scalar_prefetch = 0 : i64, scratch_operands = 1 : i64, tpu.core_type = #tpu.core_type<tc>, window_params = [{transform_indices = @transform_0, window_bounds = array<i64: 16, 32>}, {transform_indices = @transform_1, window_bounds = array<i64: 32, 64>}, {transform_indices = @transform_2, window_bounds = array<i64: 1, 64>}, {transform_indices = @transform_3, window_bounds = array<i64: 64, 32>}, {pipeline_mode = #tpu.pipeline_mode<synchronous>, transform_indices = @transform_4, window_bounds = array<i64: 1, 32>}, {pipeline_mode = #tpu.pipeline_mode<synchronous>, transform_indices = @transform_5, window_bounds = array<i64: 1, 32>}, {pipeline_mode = #tpu.pipeline_mode<synchronous>, transform_indices = @transform_6, window_bounds = array<i64: 1, 32>}, {transform_indices = @transform_7, window_bounds = array<i64: 16, 32>}]} {
    %c0_i32 = arith.constant 0 : i32
    %0 = arith.cmpi eq, %arg1, %c0_i32 : i32
    %1 = arith.extui %0 : i1 to i32
    %c0_i32_0 = arith.constant 0 : i32
    %2 = arith.cmpi ne, %1, %c0_i32_0 : i32
    scf.if %2 {
      %cst_16 = arith.constant 0.000000e+00 : f32
      %23 = vector.broadcast %cst_16 : f32 to vector<16x32xf32>
      %c0_17 = arith.constant 0 : index
      %c0_18 = arith.constant 0 : index
      %24 = vector.load %arg10[%c0_17, %c0_18] : memref<16x32xf32, #tpu.memory_space<vmem>>, vector<16x32xf32>
      tpu.vector_store %arg10[%c0_17, %c0_18], %23 {strides = array<i32>} : memref<16x32xf32, #tpu.memory_space<vmem>>, vector<16x32xf32>,
    } else {
    }
    %c0 = arith.constant 0 : index
    %c0_1 = arith.constant 0 : index
    %3 = vector.load %arg2[%c0, %c0_1] : memref<16x32xf32, #tpu.memory_space<vmem>>, vector<16x32xf32>
    %4 = arith.truncf %3 : vector<16x32xf32> to vector<16x32xbf16>
    %c0_2 = arith.constant 0 : index
    %c0_3 = arith.constant 0 : index
    %5 = vector.load %arg3[%c0_2, %c0_3] : memref<32x64xf32, #tpu.memory_space<vmem>>, vector<32x64xf32>
    %6 = arith.truncf %5 : vector<32x64xf32> to vector<32x64xbf16>
    %cst = arith.constant dense<0.000000e+00> : vector<16x64xf32>
    %7 = tpu.matmul %4, %6, %cst {dimension_numbers = #tpu.dot_dimension_numbers<[1], [0], [0], [1], [0, 0, 1, 1], [], []>} : vector<16x32xbf16>, vector<32x64xbf16>, vector<16x64xf32> -> vector<16x64xf32>
    %c0_4 = arith.constant 0 : index
    %c0_5 = arith.constant 0 : index
    %8 = vector.load %arg4[%c0_4, %c0_5] : memref<1x64xf32, #tpu.memory_space<vmem>>, vector<1x64xf32>
    %9 = vector.broadcast %8 : vector<1x64xf32> to vector<16x64xf32>
    %10 = arith.addf %7, %9 : vector<16x64xf32>
    %cst_6 = arith.constant 0.000000e+00 : f32
    %11 = vector.broadcast %cst_6 : f32 to vector<16x64xf32>
    %12 = arith.maximumf %10, %11 : vector<16x64xf32>
    %c0_7 = arith.constant 0 : index
    %c0_8 = arith.constant 0 : index
    %13 = vector.load %arg10[%c0_7, %c0_8] : memref<16x32xf32, #tpu.memory_space<vmem>>, vector<16x32xf32>
    %14 = arith.truncf %12 : vector<16x64xf32> to vector<16x64xbf16>
    %c0_9 = arith.constant 0 : index
    %c0_10 = arith.constant 0 : index
    %15 = vector.load %arg5[%c0_9, %c0_10] : memref<64x32xf32, #tpu.memory_space<vmem>>, vector<64x32xf32>
    %16 = arith.truncf %15 : vector<64x32xf32> to vector<64x32xbf16>
    %cst_11 = arith.constant dense<0.000000e+00> : vector<16x32xf32>
    %17 = tpu.matmul %14, %16, %cst_11 {dimension_numbers = #tpu.dot_dimension_numbers<[1], [0], [0], [1], [0, 0, 1, 1], [], []>} : vector<16x64xbf16>, vector<64x32xbf16>, vector<16x32xf32> -> vector<16x32xf32>
    %18 = arith.addf %13, %17 : vector<16x32xf32>
    %c0_12 = arith.constant 0 : index
    %c0_13 = arith.constant 0 : index
    %19 = vector.load %arg10[%c0_12, %c0_13] : memref<16x32xf32, #tpu.memory_space<vmem>>, vector<16x32xf32>
    tpu.vector_store %arg10[%c0_12, %c0_13], %18 {strides = array<i32>} : memref<16x32xf32, #tpu.memory_space<vmem>>, vector<16x32xf32>,
    %c0_i32_14 = arith.constant 0 : i32
    %20 = arith.cmpi eq, %arg1, %c0_i32_14 : i32
    %21 = arith.extui %20 : i1 to i32
    %c0_i32_15 = arith.constant 0 : i32
    %22 = arith.cmpi ne, %21, %c0_i32_15 : i32
    scf.if %22 {
      %c0_16 = arith.constant 0 : index
      %c0_17 = arith.constant 0 : index
      %23 = vector.load %arg10[%c0_16, %c0_17] : memref<16x32xf32, #tpu.memory_space<vmem>>, vector<16x32xf32>
      %24 = arith.addf %3, %23 : vector<16x32xf32>
      %c0_18 = arith.constant 0 : index
      %c0_19 = arith.constant 0 : index
      %25 = vector.load %arg6[%c0_18, %c0_19] : memref<1x32xf32, #tpu.memory_space<vmem>>, vector<1x32xf32>
      %26 = vector.broadcast %25 : vector<1x32xf32> to vector<16x32xf32>
      %27 = arith.addf %24, %26 : vector<16x32xf32>
      %cst_20 = arith.constant dense<0.000000e+00> : vector<16xf32>
      %28 = vector.multi_reduction <add>, %27, %cst_20 [1] : vector<16x32xf32> to vector<16xf32>
      %29 = vector.shape_cast %28 : vector<16xf32> to vector<16x1xf32>
      %cst_21 = arith.constant 3.200000e+01 : f32
      %30 = vector.broadcast %cst_21 : f32 to vector<16x1xf32>
      %31 = arith.divf %29, %30 : vector<16x1xf32>
      %32 = vector.broadcast %31 : vector<16x1xf32> to vector<16x32xf32>
      %33 = arith.subf %27, %32 : vector<16x32xf32>
      %34 = arith.mulf %33, %33 : vector<16x32xf32>
      %cst_22 = arith.constant dense<0.000000e+00> : vector<16xf32>
      %35 = vector.multi_reduction <add>, %34, %cst_22 [1] : vector<16x32xf32> to vector<16xf32>
      %36 = vector.shape_cast %35 : vector<16xf32> to vector<16x1xf32>
      %cst_23 = arith.constant 3.200000e+01 : f32
      %37 = vector.broadcast %cst_23 : f32 to vector<16x1xf32>
      %38 = arith.divf %36, %37 : vector<16x1xf32>
      %cst_24 = arith.constant 9.99999974E-6 : f32
      %39 = vector.broadcast %cst_24 : f32 to vector<16x1xf32>
      %40 = arith.addf %38, %39 : vector<16x1xf32>
      %41 = math.rsqrt %40 : vector<16x1xf32>
      %42 = vector.broadcast %41 : vector<16x1xf32> to vector<16x32xf32>
      %43 = arith.mulf %33, %42 : vector<16x32xf32>
      %c0_25 = arith.constant 0 : index
      %c0_26 = arith.constant 0 : index
      %44 = vector.load %arg7[%c0_25, %c0_26] : memref<1x32xf32, #tpu.memory_space<vmem>>, vector<1x32xf32>
      %45 = vector.broadcast %44 : vector<1x32xf32> to vector<16x32xf32>
      %46 = arith.mulf %43, %45 : vector<16x32xf32>
      %c0_27 = arith.constant 0 : index
      %c0_28 = arith.constant 0 : index
      %47 = vector.load %arg8[%c0_27, %c0_28] : memref<1x32xf32, #tpu.memory_space<vmem>>, vector<1x32xf32>
      %48 = vector.broadcast %47 : vector<1x32xf32> to vector<16x32xf32>
      %49 = arith.addf %46, %48 : vector<16x32xf32>
      %c0_29 = arith.constant 0 : index
      %c0_30 = arith.constant 0 : index
      %50 = vector.load %arg9[%c0_29, %c0_30] : memref<16x32xf32, #tpu.memory_space<vmem>>, vector<16x32xf32>
      tpu.vector_store %arg9[%c0_29, %c0_30], %49 {strides = array<i32>} : memref<16x32xf32, #tpu.memory_space<vmem>>, vector<16x32xf32>,
    } else {
    }
    return
  }
  func.func @transform_0(%arg0: i32, %arg1: i32) -> (i32, i32) {
    %c0_i32 = arith.constant 0 : i32
    %c0_i32_0 = arith.constant 0 : i32
    return %arg0, %c0_i32 : i32, i32
  }
  func.func @transform_1(%arg0: i32, %arg1: i32) -> (i32, i32) {
    %c0_i32 = arith.constant 0 : i32
    %c0_i32_0 = arith.constant 0 : i32
    return %c0_i32, %arg1 : i32, i32
  }
  func.func @transform_2(%arg0: i32, %arg1: i32) -> (i32, i32) {
    %c0_i32 = arith.constant 0 : i32
    %c0_i32_0 = arith.constant 0 : i32
    return %c0_i32, %arg1 : i32, i32
  }
  func.func @transform_3(%arg0: i32, %arg1: i32) -> (i32, i32) {
    %c0_i32 = arith.constant 0 : i32
    %c0_i32_0 = arith.constant 0 : i32
    return %arg1, %c0_i32 : i32, i32
  }
  func.func @transform_4(%arg0: i32, %arg1: i32) -> (i32, i32) {
    %c0_i32 = arith.constant 0 : i32
    %c0_i32_0 = arith.constant 0 : i32
    %c0_i32_1 = arith.constant 0 : i32
    return %c0_i32, %c0_i32_0 : i32, i32
  }
  func.func @transform_5(%arg0: i32, %arg1: i32) -> (i32, i32) {
    %c0_i32 = arith.constant 0 : i32
    %c0_i32_0 = arith.constant 0 : i32
    %c0_i32_1 = arith.constant 0 : i32
    return %c0_i32, %c0_i32_0 : i32, i32
  }
  func.func @transform_6(%arg0: i32, %arg1: i32) -> (i32, i32) {
    %c0_i32 = arith.constant 0 : i32
    %c0_i32_0 = arith.constant 0 : i32
    %c0_i32_1 = arith.constant 0 : i32
    return %c0_i32, %c0_i32_0 : i32, i32
  }
  func.func @transform_7(%arg0: i32, %arg1: i32) -> (i32, i32) {
    %c0_i32 = arith.constant 0 : i32
    %c0_i32_0 = arith.constant 0 : i32
    return %arg0, %c0_i32 : i32, i32
  }
}

module attributes {stable_mosaic.version = 11 : i64} {
  func.func @_linear_kernel_single(%arg0: i32, %arg1: i32, %arg2: i32, %arg3: memref<16x32xf32, #tpu.memory_space<vmem>>, %arg4: memref<32x128xf32, #tpu.memory_space<vmem>>, %arg5: memref<1x128xf32, #tpu.memory_space<vmem>>, %arg6: memref<16x128xf32, #tpu.memory_space<vmem>>) attributes {dimension_semantics = [#tpu.dimension_semantics<parallel>, #tpu.dimension_semantics<parallel>, #tpu.dimension_semantics<arbitrary>], iteration_bounds = array<i64: 1, 1, 1>, scalar_prefetch = 0 : i64, scratch_operands = 0 : i64, tpu.core_type = #tpu.core_type<tc>, window_params = [{transform_indices = @transform_0, window_bounds = array<i64: 16, 32>}, {transform_indices = @transform_1, window_bounds = array<i64: 32, 128>}, {transform_indices = @transform_2, window_bounds = array<i64: 1, 128>}, {transform_indices = @transform_3, window_bounds = array<i64: 16, 128>}]} {
    %c0 = arith.constant 0 : index
    %c0_0 = arith.constant 0 : index
    %0 = vector.load %arg3[%c0, %c0_0] : memref<16x32xf32, #tpu.memory_space<vmem>>, vector<16x32xf32>
    %1 = arith.truncf %0 : vector<16x32xf32> to vector<16x32xbf16>
    %c0_1 = arith.constant 0 : index
    %c0_2 = arith.constant 0 : index
    %2 = vector.load %arg4[%c0_1, %c0_2] : memref<32x128xf32, #tpu.memory_space<vmem>>, vector<32x128xf32>
    %3 = arith.truncf %2 : vector<32x128xf32> to vector<32x128xbf16>
    %cst = arith.constant dense<0.000000e+00> : vector<16x128xf32>
    %4 = tpu.matmul %1, %3, %cst {dimension_numbers = #tpu.dot_dimension_numbers<[1], [0], [0], [1], [0, 0, 1, 1], [], []>} : vector<16x32xbf16>, vector<32x128xbf16>, vector<16x128xf32> -> vector<16x128xf32>
    %c0_3 = arith.constant 0 : index
    %c0_4 = arith.constant 0 : index
    %5 = vector.load %arg5[%c0_3, %c0_4] : memref<1x128xf32, #tpu.memory_space<vmem>>, vector<1x128xf32>
    %6 = vector.broadcast %5 : vector<1x128xf32> to vector<16x128xf32>
    %7 = arith.addf %4, %6 : vector<16x128xf32>
    %c0_5 = arith.constant 0 : index
    %c0_6 = arith.constant 0 : index
    %8 = vector.load %arg6[%c0_5, %c0_6] : memref<16x128xf32, #tpu.memory_space<vmem>>, vector<16x128xf32>
    tpu.vector_store %arg6[%c0_5, %c0_6], %7 {strides = array<i32>} : memref<16x128xf32, #tpu.memory_space<vmem>>, vector<16x128xf32>,
    return
  }
  func.func @transform_0(%arg0: i32, %arg1: i32, %arg2: i32) -> (i32, i32) {
    %c0_i32 = arith.constant 0 : i32
    return %arg0, %arg2 : i32, i32
  }
  func.func @transform_1(%arg0: i32, %arg1: i32, %arg2: i32) -> (i32, i32) {
    %c0_i32 = arith.constant 0 : i32
    return %arg2, %arg1 : i32, i32
  }
  func.func @transform_2(%arg0: i32, %arg1: i32, %arg2: i32) -> (i32, i32) {
    %c0_i32 = arith.constant 0 : i32
    %c0_i32_0 = arith.constant 0 : i32
    return %c0_i32, %arg1 : i32, i32
  }
  func.func @transform_3(%arg0: i32, %arg1: i32, %arg2: i32) -> (i32, i32) {
    %c0_i32 = arith.constant 0 : i32
    return %arg0, %arg1 : i32, i32
  }
}

</mosaic_0001>

<bundles_post_ra>
// kernel: transformer_model.9
= control target key start
LH: loop header
LB: loop body
LE: loop exit
PB: predicated region body
PF: predicated region fallthrough
CT: control target
= control target key end

     0   :  { %v97_v0 = vmov 0.0   ;;  %vm98_vm0 = vmmov 0   ;;  %vm31_vm1 = vcmask 261120   ;;  %s146_s1 = inlined_call_operand.vmem [shape: f32[32,128], index: 1, kind: input, shape index: {}]   ;;  %s147_s0 = inlined_call_operand.vmem [shape: f32[16,32], index: 0, kind: input, shape index: {}]   ;;  %s148_s2 = inlined_call_operand.vmem [shape: f32[1,128], index: 2, kind: input, shape index: {}]   ;;  %s149_s3 = inlined_call_operand.vmem [shape: f32[16,128], index: 3, kind: output, shape index: {}]  }
   0x1   :  { %87 = vmatprep.subr.bf16.mxu0 %v97_v0  ;;  %v18_v1 = vld [vmem:[%s146_s1] sm:$0xff]  ;;  %v19_v2 = vld [vmem:[%s146_s1 + $0x8] sm:$0xff]  ;;  %v20_v3 = vld [vmem:[%s146_s1 + $0x10] sm:$0xff]  ;;  %91 = vmatprep.mubr.msk.bf16.mxu0 %vm98_vm0, %v97_v0 }
   0x2   :  { %v22_v4 = vpack.c.bf16 %v19_v2, %v18_v1  ;;  %v21_v5 = vld [vmem:[%s146_s1 + $0x18] sm:$0xff]  ;;  %v15_v7 = vld [vmem:[%s147_s0] sm:$0xff]  ;;  %v16_v8 = vld [vmem:[%s147_s0 + $0x8] sm:$0xff] }
   0x3   :  { %v23_v6 = vpack.c.bf16 %v21_v5, %v20_v3  ;;  %v17_v9 = vpack.c.bf16 %v16_v8, %v15_v7  ;;  %v82_v10 = vld [vmem:[%s148_s2] ss:$0 sm:$0xff] }
   0x4   :  { %88 = vmatpush3.bf16.msra.mxu0 %v22_v4 }
   0x5   :  { %89 = vmatprep.subr.bf16.mxu0 %v97_v0 }
   0x8   :  { %90 = vmatpush3.bf16.msra.mxu0 %v23_v6 }
   0xb   :  { %92 = vmatmul.mubr.msk.bf16.vlgmr.msra.gmra.mrb[0].mxu0 %vm31_vm1, %v17_v9 }
  0xde   :  { %v69_v11 = vpop.f32.mrb[0].mxu0 }
  0xdf   :  { %v70_v12 = vadd.f32 %v82_v10, %v69_v11  ;;  %v93_v13 = vpop.f32.mrb[1].mxu0 }
  0xe0   :  { %v72_v14 = vpop.f32.mrb[2].mxu0 }
  0xe1   :  { %76 = vst [vmem:[%s149_s3] sm:$0xff] %v70_v12  ;;  %v73_v15 = vadd.f32 %v82_v10, %v72_v14  ;;  %v94_v16 = vpop.f32.mrb[3].mxu0 }
  0xe3   :  { %77 = vst [vmem:[%s149_s3 + $0x8] sm:$0xff] %v73_v15 }

// kernel: transformer_model.12
= control target key start
LH: loop header
LB: loop body
LE: loop exit
PB: predicated region body
PF: predicated region fallthrough
CT: control target
= control target key end

     0   :  { %vm31_vm0 = vcmask 261120   ;;  %v268_v0 = vmov 0.0   ;;  %vm269_vm1 = vmmov 0   ;;  %vm112_vm2 = vcmask 523264   ;;  %s381_s1 = inlined_call_operand.vmem [shape: f32[32,64], index: 1, kind: input, shape index: {}]   ;;  %s382_s3 = inlined_call_operand.vmem [shape: f32[64,32], index: 3, kind: input, shape index: {}]   ;;  %s383_s0 = inlined_call_operand.vmem [shape: f32[16,32], index: 0, kind: input, shape index: {}]   ;;  %s384_s2 = inlined_call_operand.vmem [shape: f32[1,64], index: 2, kind: input, shape index: {}]   ;;  %s385_s4 = inlined_call_operand.vmem [shape: f32[1,32], index: 4, kind: input, shape index: {}]   ;;  %s386_s5 = inlined_call_operand.vmem [shape: f32[1,32], index: 5, kind: input, shape index: {}]   ;;  %s387_s6 = inlined_call_operand.vmem [shape: f32[1,32], index: 6, kind: input, shape index: {}]   ;;  %s388_s7 = inlined_call_operand.vmem [shape: f32[16,32], index: 7, kind: output, shape index: {}]  }
   0x1   :  { %242 = vmatprep.subr.bf16.mxu0 %v268_v0  ;;  %v37_v1 = vld [vmem:[%s381_s1] sm:$0xff]  ;;  %v38_v2 = vld [vmem:[%s381_s1 + $0x8] sm:$0xff]  ;;  %v39_v3 = vld [vmem:[%s381_s1 + $0x10] sm:$0xff]  ;;  %246 = vmatprep.mubr.msk.bf16.mxu0 %vm269_vm1, %v268_v0  ;;  %32 = vst.msk [vmem:[#allocation2] sm:$0xff] %vm31_vm0, %v268_v0 }
   0x2   :  { %33 = vst.msk [vmem:[#allocation2 + $0x8] sm:$0xff] %vm31_vm0, %v268_v0  ;;  %v41_v4 = vpack.c.bf16 %v38_v2, %v37_v1  ;;  %v40_v5 = vld [vmem:[%s381_s1 + $0x18] sm:$0xff]  ;;  %250 = vmatprep.subr.bf16.mxu1 %v268_v0  ;;  %258 = vmatprep.mubr.msk.bf16.mxu1 %vm269_vm1, %v268_v0  ;;  %v100_v6 = vld [vmem:[%s382_s3] sm:$0xff]  ;;  %v101_v7 = vld [vmem:[%s382_s3 + $0x8] sm:$0xff] }
   0x3   :  { %v102_v8 = vld [vmem:[%s382_s3 + $0x10] sm:$0xff]  ;;  %v42_v9 = vpack.c.bf16 %v40_v5, %v39_v3  ;;  %v34_v10 = vld [vmem:[%s383_s0] sm:$0xff]  ;;  %v35_v11 = vld [vmem:[%s383_s0 + $0x8] sm:$0xff]  ;;  %v108_v12 = vpack.c.bf16 %v101_v7, %v100_v6 }
   0x4   :  { %243 = vmatpush3.bf16.msra.mxu0 %v41_v4  ;;  %v103_v13 = vld [vmem:[%s382_s3 + $0x18] sm:$0xff]  ;;  %v36_v15 = vpack.c.bf16 %v35_v11, %v34_v10  ;;  %v104_v16 = vld [vmem:[%s382_s3 + $0x20] sm:$0xff]  ;;  %v105_v17 = vld [vmem:[%s382_s3 + $0x28] sm:$0xff] }
   0x5   :  { %244 = vmatprep.subr.bf16.mxu0 %v268_v0  ;;  %251 = vmatpush3.bf16.msra.mxu1 %v108_v12  ;;  %v109_v14 = vpack.c.bf16 %v103_v13, %v102_v8  ;;  %v110_v18 = vpack.c.bf16 %v105_v17, %v104_v16  ;;  %v106_v19 = vld [vmem:[%s382_s3 + $0x30] sm:$0xff]  ;;  %v107_v20 = vld [vmem:[%s382_s3 + $0x38] sm:$0xff]  ;;  %v228_v22 = vld [vmem:[%s384_s2] ss:$0 sm:$0xff] }
   0x6   :  { %252 = vmatprep.subr.bf16.mxu1 %v268_v0  ;;  %v111_v21 = vpack.c.bf16 %v107_v20, %v106_v19  ;;  %v231_v41 = vld [vmem:[%s385_s4] ss:$0 sm:$0xff] }
   0x7   :  { %v232_v2 = vld [vmem:[%s386_s5] ss:$0 sm:$0xff] }
   0x8   :  { %245 = vmatpush3.bf16.msra.mxu0 %v42_v9  ;;  %v97_v32 = vld [vmem:[#allocation2] sm:$0xff] }
   0x9   :  { %253 = vmatpush3.bf16.msra.mxu1 %v109_v14  ;;  %v98_v34 = vld [vmem:[#allocation2 + $0x8] sm:$0xff]  ;;  %v233_v4 = vld [vmem:[%s387_s6] ss:$0 sm:$0xff] }
   0xa   :  { %254 = vmatprep.subr.bf16.mxu1 %v268_v0 }
   0xb   :  { %247 = vmatmul.mubr.msk.bf16.vlgmr.msra.gmra.mrb[0].mxu0 %vm31_vm0, %v36_v15 }
   0xd   :  { %255 = vmatpush3.bf16.msra.mxu1 %v110_v18 }
   0xe   :  { %256 = vmatprep.subr.bf16.mxu1 %v268_v0 }
  0x11   :  { %257 = vmatpush3.bf16.msra.mxu1 %v111_v21 }
  0xde   :  { %v88_v23 = vpop.f32.mrb[0].mxu0 }
  0xdf   :  { %v89_v24 = vadd.f32 %v228_v22, %v88_v23  ;;  %v248_v25 = vpop.f32.mrb[1].mxu0 }
  0xe0   :  { %v91_v26 = vpop.f32.mrb[2].mxu0 }
  0xe1   :  { %v92_v27 = vadd.f32 %v228_v22, %v91_v26  ;;  %v249_v28 = vpop.f32.mrb[3].mxu0  ;;  %v95_v29 = vmax.f32 %v89_v24, 0.0 }
  0xe3   :  { %v96_v30 = vmax.f32 %v92_v27, 0.0 }
  0xe5   :  { %v99_v31 = vpack.c.bf16 %v96_v30, %v95_v29 }
  0xe7   :  { %259 = vmatmul.mubr.msk.bf16.vlgmr.msra.gmra.mrb[0].mxu1 %vm112_vm2, %v99_v31 }
 0x1ba   :  { %v150_v33 = vpop.f32.mrb[0].mxu1 }
 0x1bb   :  { %v157_v35 = vadd.f32 %v150_v33, %v97_v32  ;;  %v260_v36 = vpop.f32.mrb[1].mxu1 }
 0x1bc   :  { %v153_v37 = vpop.f32.mrb[2].mxu1 }
 0x1bd   :  { %159 = vst.msk [vmem:[#allocation2] sm:$0xff] %vm31_vm0, %v157_v35  ;;  %v158_v38 = vadd.f32 %v153_v37, %v98_v34  ;;  %v261_v39 = vpop.f32.mrb[3].mxu1 }
 0x1bf   :  { %160 = vst.msk [vmem:[#allocation2 + $0x8] sm:$0xff] %vm31_vm0, %v158_v38 }
 0x1c4   :  { %v164_v40 = vld [vmem:[#allocation2] sm:$0xff] }
 0x1c5   :  { %v166_v42 = vadd.f32 %v164_v40, %v34_v10 }
 0x1c6   :  { %v165_v43 = vld [vmem:[#allocation2 + $0x8] sm:$0xff] }
 0x1c7   :  { %v175_v44 = vadd.f32 %v231_v41, %v166_v42  ;;  %v167_v45 = vadd.f32 %v165_v43, %v35_v11 }
 0x1c9   :  { %v177_v46 = vsel %vm31_vm0, %v175_v44, 0.0  ;;  %v176_v47 = vadd.f32 %v231_v41, %v167_v45 }
 0x1ca   :  { %178 = vadd.xlane.f32.xlu0 %v177_v46 }
 0x1cb   :  { %v180_v48 = vsel %vm31_vm0, %v176_v47, 0.0 }
 0x1ce   :  { %181 = vadd.xlane.f32.xlu0 %v180_v48 }
 0x257   :  { %v179_v49 = vpop.xlane.xlu0 %178 }
 0x258   :  { %v184_v50 = vmul.f32 0.03125, %v179_v49 }
 0x25a   :  { %v186_v51 = vsub.f32 %v175_v44, %v184_v50 }
 0x25b   :  { %v182_v52 = vpop.xlane.xlu0 %181 }
 0x25c   :  { %v185_v53 = vmul.f32 0.03125, %v182_v52  ;;  %v188_v54 = vmul.f32 %v186_v51, %v186_v51 }
 0x25e   :  { %v187_v55 = vsub.f32 %v176_v47, %v185_v53  ;;  %v190_v56 = vsel %vm31_vm0, %v188_v54, 0.0 }
 0x25f   :  { %191 = vadd.xlane.f32.xlu1 %v190_v56 }
 0x260   :  { %v189_v57 = vmul.f32 %v187_v55, %v187_v55 }
 0x262   :  { %v193_v58 = vsel %vm31_vm0, %v189_v57, 0.0 }
 0x263   :  { %194 = vadd.xlane.f32.xlu1 %v193_v58 }
 0x2ec   :  { %v192_v59 = vpop.xlane.xlu1 %191 }
 0x2ed   :  { %v196_v60 = vmul.f32 0.03125, %v192_v59 }
 0x2ef   :  { %v198_v61 = vadd.f32 1e-05, %v196_v60 }
 0x2f0   :  { %v195_v62 = vpop.xlane.xlu1 %194 }
 0x2f1   :  { %264 = vrsqrt.f32 %v198_v61  ;;  %v197_v63 = vmul.f32 0.03125, %v195_v62 }
 0x2f3   :  { %v199_v0 = vadd.f32 1e-05, %v197_v63 }
 0x2f5   :  { %266 = vrsqrt.f32 %v199_v0 }
 0x2fb   :  { %v265_v1 = vpop.eup %264 }
 0x2fc   :  { %v202_v3 = vmul.f32 %v265_v1, %v186_v51 }
 0x2fe   :  { %v211_v5 = vmul.f32 %v232_v2, %v202_v3 }
 0x2ff   :  { %v267_v6 = vpop.eup %266 }
 0x300   :  { %v220_v7 = vadd.f32 %v233_v4, %v211_v5  ;;  %v203_v8 = vmul.f32 %v267_v6, %v187_v55 }
 0x302   :  { %222 = vst.msk [vmem:[%s388_s7] sm:$0xff] %vm31_vm0, %v220_v7  ;;  %v212_v9 = vmul.f32 %v232_v2, %v203_v8 }
 0x304   :  { %v221_v10 = vadd.f32 %v233_v4, %v212_v9 }
 0x306   :  { %223 = vst.msk [vmem:[%s388_s7 + $0x8] sm:$0xff] %vm31_vm0, %v221_v10 }

// kernel: transformer_model.11
= control target key start
LH: loop header
LB: loop body
LE: loop exit
PB: predicated region body
PF: predicated region fallthrough
CT: control target
= control target key end

     0   :  { %v161_v0 = vmov 0.0   ;;  %vm162_vm0 = vmmov 0   ;;  %vm40_vm1 = vcmask 261120   ;;  %s244_s2 = inlined_call_operand.vmem [shape: f32[32,32], index: 2, kind: input, shape index: {}]   ;;  %s245_s0 = inlined_call_operand.vmem [shape: f32[16,32], index: 0, kind: input, shape index: {}]   ;;  %s246_s3 = inlined_call_operand.vmem [shape: f32[1,32], index: 3, kind: input, shape index: {}]   ;;  %s247_s1 = inlined_call_operand.vmem [shape: f32[16,32], index: 1, kind: input, shape index: {}]   ;;  %s248_s4 = inlined_call_operand.vmem [shape: f32[1,32], index: 4, kind: input, shape index: {}]   ;;  %s249_s5 = inlined_call_operand.vmem [shape: f32[1,32], index: 5, kind: input, shape index: {}]   ;;  %s250_s6 = inlined_call_operand.vmem [shape: f32[16,32], index: 6, kind: output, shape index: {}]  }
   0x1   :  { %147 = vmatprep.subr.bf16.mxu0 %v161_v0  ;;  %v27_v1 = vld [vmem:[%s244_s2] sm:$0xff]  ;;  %v28_v2 = vld [vmem:[%s244_s2 + $0x8] sm:$0xff]  ;;  %v29_v3 = vld [vmem:[%s244_s2 + $0x10] sm:$0xff]  ;;  %151 = vmatprep.mubr.msk.bf16.mxu0 %vm162_vm0, %v161_v0 }
   0x2   :  { %v31_v4 = vpack.c.bf16 %v28_v2, %v27_v1  ;;  %v30_v5 = vld [vmem:[%s244_s2 + $0x18] sm:$0xff]  ;;  %v24_v7 = vld [vmem:[%s245_s0] sm:$0xff]  ;;  %v25_v8 = vld [vmem:[%s245_s0 + $0x8] sm:$0xff] }
   0x3   :  { %v32_v6 = vpack.c.bf16 %v30_v5, %v29_v3  ;;  %v26_v9 = vpack.c.bf16 %v25_v8, %v24_v7  ;;  %v140_v10 = vld [vmem:[%s246_s3] ss:$0 sm:$0xff]  ;;  %v86_v16 = vld [vmem:[%s247_s1 + $0x8] sm:$0xff] }
   0x4   :  { %148 = vmatpush3.bf16.msra.mxu0 %v31_v4  ;;  %v85_v12 = vld [vmem:[%s247_s1] sm:$0xff] }
   0x5   :  { %149 = vmatprep.subr.bf16.mxu0 %v161_v0  ;;  %v142_v40 = vld [vmem:[%s248_s4] ss:$0 sm:$0xff] }
   0x6   :  { %v143_v42 = vld [vmem:[%s249_s5] ss:$0 sm:$0xff] }
   0x8   :  { %150 = vmatpush3.bf16.msra.mxu0 %v32_v6 }
   0xb   :  { %152 = vmatmul.mubr.msk.bf16.vlgmr.msra.gmra.mrb[0].mxu0 %vm40_vm1, %v26_v9 }
  0xde   :  { %v78_v11 = vpop.f32.mrb[0].mxu0 }
  0xdf   :  { %v79_v13 = vadd.f32 %v140_v10, %v78_v11  ;;  %v153_v14 = vpop.f32.mrb[1].mxu0 }
  0xe0   :  { %v81_v15 = vpop.f32.mrb[2].mxu0 }
  0xe1   :  { %v82_v17 = vadd.f32 %v140_v10, %v81_v15  ;;  %v154_v18 = vpop.f32.mrb[3].mxu0  ;;  %v87_v19 = vadd.f32 %v85_v12, %v79_v13 }
  0xe3   :  { %v89_v20 = vsel %vm40_vm1, %v87_v19, 0.0  ;;  %v88_v21 = vadd.f32 %v86_v16, %v82_v17 }
  0xe4   :  { %90 = vadd.xlane.f32.xlu0 %v89_v20 }
  0xe5   :  { %v92_v22 = vsel %vm40_vm1, %v88_v21, 0.0 }
  0xe8   :  { %93 = vadd.xlane.f32.xlu0 %v92_v22 }
 0x171   :  { %v91_v23 = vpop.xlane.xlu0 %90 }
 0x172   :  { %v96_v24 = vmul.f32 0.03125, %v91_v23 }
 0x174   :  { %v98_v25 = vsub.f32 %v87_v19, %v96_v24 }
 0x175   :  { %v94_v26 = vpop.xlane.xlu0 %93 }
 0x176   :  { %v97_v27 = vmul.f32 0.03125, %v94_v26  ;;  %v100_v28 = vmul.f32 %v98_v25, %v98_v25 }
 0x178   :  { %v99_v29 = vsub.f32 %v88_v21, %v97_v27  ;;  %v102_v30 = vsel %vm40_vm1, %v100_v28, 0.0 }
 0x179   :  { %103 = vadd.xlane.f32.xlu1 %v102_v30 }
 0x17a   :  { %v101_v31 = vmul.f32 %v99_v29, %v99_v29 }
 0x17c   :  { %v105_v32 = vsel %vm40_vm1, %v101_v31, 0.0 }
 0x17d   :  { %106 = vadd.xlane.f32.xlu1 %v105_v32 }
 0x206   :  { %v104_v33 = vpop.xlane.xlu1 %103 }
 0x207   :  { %v108_v34 = vmul.f32 0.03125, %v104_v33 }
 0x209   :  { %v110_v35 = vadd.f32 1e-05, %v108_v34 }
 0x20a   :  { %v107_v36 = vpop.xlane.xlu1 %106 }
 0x20b   :  { %157 = vrsqrt.f32 %v110_v35  ;;  %v109_v37 = vmul.f32 0.03125, %v107_v36 }
 0x20d   :  { %v111_v38 = vadd.f32 1e-05, %v109_v37 }
 0x20f   :  { %159 = vrsqrt.f32 %v111_v38 }
 0x215   :  { %v158_v39 = vpop.eup %157 }
 0x216   :  { %v114_v41 = vmul.f32 %v158_v39, %v98_v25 }
 0x218   :  { %v123_v43 = vmul.f32 %v142_v40, %v114_v41 }
 0x219   :  { %v160_v44 = vpop.eup %159 }
 0x21a   :  { %v132_v45 = vadd.f32 %v143_v42, %v123_v43  ;;  %v115_v46 = vmul.f32 %v160_v44, %v99_v29 }
 0x21c   :  { %134 = vst.msk [vmem:[%s250_s6] sm:$0xff] %vm40_vm1, %v132_v45  ;;  %v124_v47 = vmul.f32 %v142_v40, %v115_v46 }
 0x21e   :  { %v133_v48 = vadd.f32 %v143_v42, %v124_v47 }
 0x220   :  { %135 = vst.msk [vmem:[%s250_s6 + $0x8] sm:$0xff] %vm40_vm1, %v133_v48 }

// kernel: transformer_model.10
= control target key start
LH: loop header
LB: loop body
LE: loop exit
PB: predicated region body
PF: predicated region fallthrough
CT: control target
= control target key end

     0   :  { %vm36_vm0 = vcmask 64512   ;;  %v1434_v0 = vmov 0.0   ;;  %vm1435_vm1 = vmmov 0   ;;  %vm19_vm2 = vcmask 7168   ;;  %s1898_s1 = inlined_call_operand.vmem [shape: f32[8,8,8], index: 1, kind: input, shape index: {}]   ;;  %s1899_s0 = inlined_call_operand.vmem [shape: f32[8,8,8], index: 0, kind: input, shape index: {}]   ;;  %s1900_s2 = inlined_call_operand.vmem [shape: f32[8,8,8], index: 2, kind: input, shape index: {}]   ;;  %s1901_s3 = inlined_call_operand.vmem [shape: f32[8,8,8], index: 3, kind: output, shape index: {}]  }
   0x1   :  { %1284 = vmatprep.subr.bf16.mxu0 %v1434_v0  ;;  %v76_v1 = vld [vmem:[%s1898_s1] sm:$0xff]  ;;  %37 = vst.msk [vmem:[#allocation4] sm:$0xff] %vm36_vm0, %v1434_v0  ;;  %38 = vst.msk [vmem:[#allocation4 + $0x8] sm:$0xff] %vm36_vm0, %v1434_v0  ;;  %1290 = vmatprep.subr.bf16.mxu1 %v1434_v0  ;;  %v77_v2 = vld [vmem:[%s1898_s1 + $0x8] sm:$0xff]  ;;  %v1436_v49 = vmov -1e+30   ;;  %v477_v50 = vlaneseq }
   0x2   :  { %39 = vst.msk [vmem:[#allocation4 + $0x10] sm:$0xff] %vm36_vm0, %v1434_v0  ;;  %40 = vst.msk [vmem:[#allocation4 + $0x18] sm:$0xff] %vm36_vm0, %v1434_v0  ;;  %v52_v3 = vld [vmem:[%s1899_s0] sm:$0xff]  ;;  %v84_v4 = vpack.c.bf16 %v76_v1, %v76_v1  ;;  %v85_v5 = vpack.c.bf16 %v77_v2, %v77_v2  ;;  %1286 = vmatprep.mubr.msk.bf16.mxu0 %vm1435_vm1, %v1434_v0  ;;  %1292 = vmatprep.mubr.msk.bf16.mxu1 %vm1435_vm1, %v1434_v0  ;;  %v53_v6 = vld [vmem:[%s1899_s0 + $0x8] sm:$0xff]  ;;  %vm758_vm6 = vcmask 1043456  }
   0x3   :  { %41 = vst.msk [vmem:[#allocation4 + $0x20] sm:$0xff] %vm36_vm0, %v1434_v0  ;;  %42 = vst.msk [vmem:[#allocation4 + $0x28] sm:$0xff] %vm36_vm0, %v1434_v0  ;;  %v78_v7 = vld [vmem:[%s1898_s1 + $0x10] sm:$0xff]  ;;  %v79_v8 = vld [vmem:[%s1898_s1 + $0x18] sm:$0xff]  ;;  %v60_v11 = vmul.f32 0.35355338, %v52_v3 }
   0x4   :  { %43 = vst.msk [vmem:[#allocation4 + $0x30] sm:$0xff] %vm36_vm0, %v1434_v0  ;;  %44 = vst.msk [vmem:[#allocation4 + $0x38] sm:$0xff] %vm36_vm0, %v1434_v0  ;;  %v113_v9 = vsel %vm36_vm0, %v84_v4, 0  ;;  %v159_v10 = vsel %vm36_vm0, %v85_v5, 0  ;;  %v61_v12 = vmul.f32 0.35355338, %v53_v6  ;;  %v86_v13 = vpack.c.bf16 %v78_v7, %v78_v7 }
   0x5   :  { %1285 = vmatpush3.bf16.xpose.msra.mxu0 %v113_v9  ;;  %1291 = vmatpush3.bf16.xpose.msra.mxu1 %v159_v10  ;;  %v87_v14 = vpack.c.bf16 %v79_v8, %v79_v8  ;;  %v68_v15 = vpack.c.bf16 %v60_v11, %v60_v11  ;;  %v54_v17 = vld [vmem:[%s1899_s0 + $0x10] sm:$0xff]  ;;  %v55_v18 = vld [vmem:[%s1899_s0 + $0x18] sm:$0xff]  ;;  %v80_v21 = vld [vmem:[%s1898_s1 + $0x20] sm:$0xff]  ;;  %20 = vst.msk [vmem:[#allocation2] sm:$0xff] %vm19_vm2, %v1436_v49  ;;  %v478_v51 = vshrl.u32 %v477_v50, 7  ;;  %v482_v52 = vand.u32 127, %v477_v50 }
   0x6   :  { %1296 = vmatprep.subr.bf16.mxu0 %v1434_v0  ;;  %1302 = vmatprep.subr.bf16.mxu1 %v1434_v0  ;;  %v69_v16 = vpack.c.bf16 %v61_v12, %v61_v12  ;;  %v205_v19 = vsel %vm36_vm0, %v86_v13, 0  ;;  %v81_v22 = vld [vmem:[%s1898_s1 + $0x28] sm:$0xff]  ;;  %v62_v23 = vmul.f32 0.35355338, %v54_v17  ;;  %v63_v24 = vmul.f32 0.35355338, %v55_v18 }
   0x7   :  { %v251_v20 = vsel %vm36_vm0, %v87_v14, 0  ;;  %v88_v25 = vpack.c.bf16 %v80_v21, %v80_v21  ;;  %v89_v26 = vpack.c.bf16 %v81_v22, %v81_v22  ;;  %v56_v29 = vld [vmem:[%s1899_s0 + $0x20] sm:$0xff]  ;;  %v57_v30 = vld [vmem:[%s1899_s0 + $0x28] sm:$0xff]  ;;  %v82_v33 = vld [vmem:[%s1898_s1 + $0x30] sm:$0xff]  ;;  %21 = vst.msk [vmem:[#allocation2 + $0x8] sm:$0xff] %vm19_vm2, %v1436_v49  ;;  %vm485_vm3 = vcmp.le.s32.totalorder %v482_v52, %v478_v51 }
   0x8   :  { %v70_v27 = vpack.c.bf16 %v62_v23, %v62_v23  ;;  %v71_v28 = vpack.c.bf16 %v63_v24, %v63_v24  ;;  %v83_v34 = vld [vmem:[%s1898_s1 + $0x38] sm:$0xff]  ;;  %v64_v35 = vmul.f32 0.35355338, %v56_v29  ;;  %v65_v36 = vmul.f32 0.35355338, %v57_v30  ;;  %v58_v41 = vld [vmem:[%s1899_s0 + $0x30] sm:$0xff] }
   0x9   :  { %v297_v31 = vsel %vm36_vm0, %v88_v25, 0  ;;  %v343_v32 = vsel %vm36_vm0, %v89_v26, 0  ;;  %v90_v37 = vpack.c.bf16 %v82_v33, %v82_v33  ;;  %v91_v38 = vpack.c.bf16 %v83_v34, %v83_v34  ;;  %v59_v42 = vld [vmem:[%s1899_s0 + $0x38] sm:$0xff]  ;;  %22 = vst.msk [vmem:[#allocation2 + $0x10] sm:$0xff] %vm19_vm2, %v1436_v49  ;;  %23 = vst.msk [vmem:[#allocation2 + $0x18] sm:$0xff] %vm19_vm2, %v1436_v49 }
   0xa   :  { %v72_v39 = vpack.c.bf16 %v64_v35, %v64_v35  ;;  %v73_v40 = vpack.c.bf16 %v65_v36, %v65_v36  ;;  %v66_v45 = vmul.f32 0.35355338, %v58_v41  ;;  %v67_v46 = vmul.f32 0.35355338, %v59_v42  ;;  %24 = vst.msk [vmem:[#allocation2 + $0x20] sm:$0xff] %vm19_vm2, %v1436_v49  ;;  %25 = vst.msk [vmem:[#allocation2 + $0x28] sm:$0xff] %vm19_vm2, %v1436_v49 }
   0xb   :  { %v389_v43 = vsel %vm36_vm0, %v90_v37, 0  ;;  %v435_v44 = vsel %vm36_vm0, %v91_v38, 0  ;;  %26 = vst.msk [vmem:[#allocation2 + $0x30] sm:$0xff] %vm19_vm2, %v1436_v49  ;;  %27 = vst.msk [vmem:[#allocation2 + $0x38] sm:$0xff] %vm19_vm2, %v1436_v49  ;;  %vm486_vm4 = vcmp.lt.s32.totalorder %v482_v52, 8 }
   0xc   :  { %1287 = vmatmul.mubr.msk.bf16.vlgmr.msra.gmra.mrb[0].mxu0 %vm36_vm0, %v68_v15  ;;  %1293 = vmatmul.mubr.msk.bf16.vlgmr.msra.gmra.mrb[0].mxu1 %vm36_vm0, %v69_v16  ;;  %v74_v47 = vpack.c.bf16 %v66_v45, %v66_v45  ;;  %v75_v48 = vpack.c.bf16 %v67_v46, %v67_v46  ;;  %28 = vst.msk [vmem:[#allocation3] sm:$0xff] %vm19_vm2, %v1434_v0  ;;  %29 = vst.msk [vmem:[#allocation3 + $0x8] sm:$0xff] %vm19_vm2, %v1434_v0 }
   0xd   :  { %1297 = vmatpush3.bf16.xpose.msra.mxu0 %v205_v19  ;;  %1303 = vmatpush3.bf16.xpose.msra.mxu1 %v251_v20  ;;  %30 = vst.msk [vmem:[#allocation3 + $0x10] sm:$0xff] %vm19_vm2, %v1434_v0  ;;  %31 = vst.msk [vmem:[#allocation3 + $0x18] sm:$0xff] %vm19_vm2, %v1434_v0 }
   0xe   :  { %1298 = vmatprep.mubr.msk.bf16.mxu0 %vm1435_vm1, %v1434_v0  ;;  %1308 = vmatprep.subr.bf16.mxu0 %v1434_v0  ;;  %32 = vst.msk [vmem:[#allocation3 + $0x20] sm:$0xff] %vm19_vm2, %v1434_v0  ;;  %33 = vst.msk [vmem:[#allocation3 + $0x28] sm:$0xff] %vm19_vm2, %v1434_v0 }
   0xf   :  { %1304 = vmatprep.mubr.msk.bf16.mxu1 %vm1435_vm1, %v1434_v0  ;;  %1314 = vmatprep.subr.bf16.mxu1 %v1434_v0  ;;  %34 = vst.msk [vmem:[#allocation3 + $0x30] sm:$0xff] %vm19_vm2, %v1434_v0  ;;  %35 = vst.msk [vmem:[#allocation3 + $0x38] sm:$0xff] %vm19_vm2, %v1434_v0 }
  0x10   :  { %vm1592_vm5 = vmand %vm485_vm3, %vm486_vm4  ;;  %v1669_v51 = vld [vmem:[#allocation2 + $0x18] sm:$0xff] }
  0x14   :  { %1299 = vmatmul.mubr.msk.bf16.vlgmr.msra.gmra.mrb[4].mxu0 %vm36_vm0, %v70_v27  ;;  %1305 = vmatmul.mubr.msk.bf16.vlgmr.msra.gmra.mrb[4].mxu1 %vm36_vm0, %v71_v28  ;;  %v1437_v27 = vmov 0  }
  0x15   :  { %1309 = vmatpush3.bf16.xpose.msra.mxu0 %v297_v31  ;;  %1315 = vmatpush3.bf16.xpose.msra.mxu1 %v343_v32 }
  0x16   :  { %1310 = vmatprep.mubr.msk.bf16.mxu0 %vm1435_vm1, %v1434_v0  ;;  %1320 = vmatprep.subr.bf16.mxu0 %v1434_v0 }
  0x17   :  { %1316 = vmatprep.mubr.msk.bf16.mxu1 %vm1435_vm1, %v1434_v0  ;;  %1326 = vmatprep.subr.bf16.mxu1 %v1434_v0 }
  0x18   :  { %1384 = vset.pattern.permute.xlu0 %v1437_v27  ;;  %1385 = vset.pattern.permute.xlu1 %v1437_v27 }
  0x1c   :  { %1311 = vmatmul.mubr.msk.bf16.vlgmr.msra.gmra.mrb[8].mxu0 %vm36_vm0, %v72_v39  ;;  %1317 = vmatmul.mubr.msk.bf16.vlgmr.msra.gmra.mrb[8].mxu1 %vm36_vm0, %v73_v40  ;;  %v1644_v40 = vld [vmem:[#allocation2] sm:$0xff] }
  0x1d   :  { %1321 = vmatpush3.bf16.xpose.msra.mxu0 %v389_v43  ;;  %1327 = vmatpush3.bf16.xpose.msra.mxu1 %v435_v44  ;;  %v1649_v43 = vld [vmem:[#allocation2 + $0x8] sm:$0xff] }
  0x1e   :  { %1322 = vmatprep.mubr.msk.bf16.mxu0 %vm1435_vm1, %v1434_v0  ;;  %1328 = vmatprep.mubr.msk.bf16.mxu1 %vm1435_vm1, %v1434_v0 }
  0x1f   :  { %1332 = vmatprep.subr.bf16.mxu0 %v1434_v0  ;;  %1338 = vmatprep.subr.bf16.mxu1 %v1434_v0 }
  0x24   :  { %1323 = vmatmul.mubr.msk.bf16.vlgmr.msra.gmra.mrb[12].mxu0 %vm36_vm0, %v74_v47  ;;  %1329 = vmatmul.mubr.msk.bf16.vlgmr.msra.gmra.mrb[12].mxu1 %vm36_vm0, %v75_v48  ;;  %v1659_v47 = vld [vmem:[#allocation2 + $0x10] sm:$0xff] }
  0x25   :  { %1334 = vmatprep.mubr.msk.bf16.mxu0 %vm1435_vm1, %v1434_v0  ;;  %1340 = vmatprep.mubr.msk.bf16.mxu1 %vm1435_vm1, %v1434_v0 }
  0xdf   :  { %v149_v54 = vpop.f32.mrb[0].mxu0  ;;  %v195_v55 = vpop.f32.mrb[0].mxu1 }
  0xe0   :  { %v1598_v56 = vsel %vm1592_vm5, %v149_v54, -1e+30  ;;  %v1288_v57 = vpop.f32.mrb[1].mxu0  ;;  %v1602_v58 = vsel %vm1592_vm5, %v195_v55, -1e+30  ;;  %v1294_v59 = vpop.f32.mrb[1].mxu1 }
  0xe1   :  { %v152_v60 = vpop.f32.mrb[2].mxu0  ;;  %v506_v61 = vsel %vm36_vm0, %v1598_v56, -inf  ;;  %v198_v62 = vpop.f32.mrb[2].mxu1  ;;  %v509_v2 = vsel %vm36_vm0, %v1602_v58, -inf  ;;  %v1679_v57 = vld [vmem:[#allocation2 + $0x20] sm:$0xff]  ;;  %v1681_v59 = vld [vmem:[#allocation2 + $0x28] sm:$0xff] }
  0xe2   :  { %507 = vmax.xlane.f32.xlu0 %v506_v61  ;;  %v1289_v63 = vpop.f32.mrb[3].mxu0  ;;  %v1295_v1 = vpop.f32.mrb[3].mxu1  ;;  %v92_v60 = vld [vmem:[%s1900_s2] sm:$0xff] }
  0xe3   :  { %v100_v62 = vpack.c.bf16 %v92_v60, %v92_v60 }
  0xe6   :  { %510 = vmax.xlane.f32.xlu0 %v509_v2 }
  0xe7   :  { %v241_v3 = vpop.f32.mrb[4].mxu0  ;;  %v287_v4 = vpop.f32.mrb[4].mxu1 }
  0xe8   :  { %v1610_v5 = vsel %vm1592_vm5, %v241_v3, -1e+30  ;;  %v1300_v6 = vpop.f32.mrb[5].mxu0  ;;  %v1614_v7 = vsel %vm1592_vm5, %v287_v4, -1e+30  ;;  %v1306_v8 = vpop.f32.mrb[5].mxu1 }
  0xe9   :  { %v244_v9 = vpop.f32.mrb[6].mxu0  ;;  %v512_v10 = vsel %vm36_vm0, %v1610_v5, -inf  ;;  %v290_v11 = vpop.f32.mrb[6].mxu1  ;;  %v515_v14 = vsel %vm36_vm0, %v1614_v7, -inf  ;;  %v760_v4 = vsel %vm758_vm6, %v100_v62, 0  ;;  %v93_v6 = vld [vmem:[%s1900_s2 + $0x8] sm:$0xff] }
  0xea   :  { %513 = vmax.xlane.f32.xlu1 %v512_v10  ;;  %v1301_v12 = vpop.f32.mrb[7].mxu0  ;;  %v1307_v13 = vpop.f32.mrb[7].mxu1  ;;  %1333 = vmatpush3.bf16.msra.mxu0 %v760_v4  ;;  %v101_v10 = vpack.c.bf16 %v93_v6, %v93_v6 }
  0xeb   :  { %1344 = vmatprep.subr.bf16.mxu0 %v1434_v0  ;;  %v1712_v12 = vld [vmem:[#allocation2 + $0x30] sm:$0xff]  ;;  %v1714_v13 = vld [vmem:[#allocation2 + $0x38] sm:$0xff] }
  0xec   :  { %v806_v11 = vsel %vm758_vm6, %v101_v10, 0 }
  0xed   :  { %1339 = vmatpush3.bf16.msra.mxu1 %v806_v11 }
  0xee   :  { %516 = vmax.xlane.f32.xlu1 %v515_v14  ;;  %v94_v14 = vld [vmem:[%s1900_s2 + $0x10] sm:$0xff]  ;;  %1350 = vmatprep.subr.bf16.mxu1 %v1434_v0 }
  0xef   :  { %v333_v15 = vpop.f32.mrb[8].mxu0  ;;  %v379_v16 = vpop.f32.mrb[8].mxu1 }
  0xf0   :  { %v1622_v17 = vsel %vm1592_vm5, %v333_v15, -1e+30  ;;  %v1312_v18 = vpop.f32.mrb[9].mxu0  ;;  %v1626_v19 = vsel %vm1592_vm5, %v379_v16, -1e+30  ;;  %v1318_v20 = vpop.f32.mrb[9].mxu1  ;;  %v102_v15 = vpack.c.bf16 %v94_v14, %v94_v14 }
  0xf1   :  { %v336_v21 = vpop.f32.mrb[10].mxu0  ;;  %v518_v22 = vsel %vm36_vm0, %v1622_v17, -inf  ;;  %v382_v23 = vpop.f32.mrb[10].mxu1  ;;  %v521_v24 = vsel %vm36_vm0, %v1626_v19, -inf }
  0xf2   :  { %519 = vmax.xlane.f32.xlu0 %v518_v22  ;;  %v1313_v25 = vpop.f32.mrb[11].mxu0  ;;  %v1319_v26 = vpop.f32.mrb[11].mxu1  ;;  %522 = vmax.xlane.f32.xlu1 %v521_v24  ;;  %v852_v22 = vsel %vm758_vm6, %v102_v15, 0  ;;  %v95_v23 = vld [vmem:[%s1900_s2 + $0x18] sm:$0xff] }
  0xf3   :  { %v103_v26 = vpack.c.bf16 %v95_v23, %v95_v23 }
  0xf5   :  { %v898_v27 = vsel %vm758_vm6, %v103_v26, 0 }
  0xf7   :  { %v425_v28 = vpop.f32.mrb[12].mxu0  ;;  %v471_v29 = vpop.f32.mrb[12].mxu1 }
  0xf8   :  { %v1634_v30 = vsel %vm1592_vm5, %v425_v28, -1e+30  ;;  %v1324_v31 = vpop.f32.mrb[13].mxu0  ;;  %v1638_v32 = vsel %vm1592_vm5, %v471_v29, -1e+30  ;;  %v1330_v33 = vpop.f32.mrb[13].mxu1 }
  0xf9   :  { %v428_v34 = vpop.f32.mrb[14].mxu0  ;;  %v524_v35 = vsel %vm36_vm0, %v1634_v30, -inf  ;;  %v474_v36 = vpop.f32.mrb[14].mxu1  ;;  %v527_v37 = vsel %vm36_vm0, %v1638_v32, -inf  ;;  %v96_v28 = vld [vmem:[%s1900_s2 + $0x20] sm:$0xff]  ;;  %v97_v33 = vld [vmem:[%s1900_s2 + $0x28] sm:$0xff] }
  0xfa   :  { %525 = vmax.xlane.f32.xlu0 %v524_v35  ;;  %v1325_v38 = vpop.f32.mrb[15].mxu0  ;;  %v1331_v39 = vpop.f32.mrb[15].mxu1  ;;  %528 = vmax.xlane.f32.xlu1 %v527_v37  ;;  %v104_v29 = vpack.c.bf16 %v96_v28, %v96_v28  ;;  %v105_v34 = vpack.c.bf16 %v97_v33, %v97_v33  ;;  %v98_v36 = vld [vmem:[%s1900_s2 + $0x30] sm:$0xff] }
  0xfb   :  { %v106_v37 = vpack.c.bf16 %v98_v36, %v98_v36  ;;  %v99_v39 = vld [vmem:[%s1900_s2 + $0x38] sm:$0xff] }
  0xfc   :  { %v1746_v31 = vsel %vm758_vm6, %v104_v29, 0  ;;  %v1752_v35 = vsel %vm758_vm6, %v105_v34, 0 }
  0xfd   :  { %v1758_v38 = vsel %vm758_vm6, %v106_v37, 0 }
 0x16f   :  { %v508_v41 = vpop.xlane.xlu0 %507 }
 0x170   :  { %v1647_v42 = vmax.f32 %v1644_v40, %v508_v41  ;;  %v107_v41 = vpack.c.bf16 %v99_v39, %v99_v39 }
 0x172   :  { %v538_v44 = vsub.f32 %v1644_v40, %v1647_v42  ;;  %1140 = vst.msk [vmem:[#allocation2] sm:$0xff] %vm19_vm2, %v1647_v42  ;;  %564 = vperm.xlu0 %1384, %v1647_v42  }
 0x173   :  { %v511_v45 = vpop.xlane.xlu0 %510 }
 0x174   :  { %v1657_v46 = vmax.f32 %v1649_v43, %v511_v45  ;;  %v1764_v45 = vsel %vm758_vm6, %v107_v41, 0 }
 0x176   :  { %v539_v48 = vsub.f32 %v1649_v43, %v1657_v46  ;;  %1141 = vst.msk [vmem:[#allocation2 + $0x8] sm:$0xff] %vm19_vm2, %v1657_v46  ;;  %569 = vperm.xlu1 %1385, %v1657_v46  }
 0x177   :  { %v514_v49 = vpop.xlane.xlu1 %513 }
 0x178   :  { %v1667_v50 = vmax.f32 %v1659_v47, %v514_v49 }
 0x17a   :  { %v540_v52 = vsub.f32 %v1659_v47, %v1667_v50  ;;  %1142 = vst.msk [vmem:[#allocation2 + $0x10] sm:$0xff] %vm19_vm2, %v1667_v50  ;;  %574 = vperm.xlu1 %1385, %v1667_v50  }
 0x17b   :  { %v517_v54 = vpop.xlane.xlu1 %516 }
 0x17c   :  { %v1677_v55 = vmax.f32 %v1669_v51, %v517_v54  ;;  %v550_v53 = vmul.f32 1.442695, %v540_v52 }
 0x17e   :  { %v541_v61 = vsub.f32 %v1669_v51, %v1677_v55  ;;  %1143 = vst.msk [vmem:[#allocation2 + $0x18] sm:$0xff] %vm19_vm2, %v1677_v55  ;;  %579 = vperm.xlu1 %1385, %v1677_v55  }
 0x17f   :  { %v520_v63 = vpop.xlane.xlu0 %519  ;;  %v523_v1 = vpop.xlane.xlu1 %522 }
 0x180   :  { %v1692_v2 = vmax.f32 %v1679_v57, %v520_v63  ;;  %v1695_v3 = vmax.f32 %v1681_v59, %v523_v1 }
 0x182   :  { %v542_v8 = vsub.f32 %v1679_v57, %v1692_v2  ;;  %1144 = vst.msk [vmem:[#allocation2 + $0x20] sm:$0xff] %vm19_vm2, %v1692_v2  ;;  %584 = vperm.xlu1 %1385, %v1692_v2   ;;  %v543_v9 = vsub.f32 %v1681_v59, %v1695_v3  ;;  %1145 = vst.msk [vmem:[#allocation2 + $0x28] sm:$0xff] %vm19_vm2, %v1695_v3  ;;  %v634_v59 = vld [vmem:[#allocation3] sm:$0xff] }
 0x184   :  { %v554_v43 = vmul.f32 1.442695, %v542_v8  ;;  %v556_v40 = vmul.f32 1.442695, %v543_v9 }
 0x186   :  { %589 = vperm.xlu1 %1385, %v1695_v3   ;;  %v635_v3 = vld [vmem:[#allocation3 + $0x8] sm:$0xff] }
 0x187   :  { %v526_v16 = vpop.xlane.xlu0 %525  ;;  %v529_v18 = vpop.xlane.xlu1 %528 }
 0x188   :  { %v1722_v20 = vmax.f32 %v1712_v12, %v526_v16  ;;  %v1725_v21 = vmax.f32 %v1714_v13, %v529_v18 }
 0x18a   :  { %v544_v24 = vsub.f32 %v1712_v12, %v1722_v20  ;;  %1146 = vst.msk [vmem:[#allocation2 + $0x30] sm:$0xff] %vm19_vm2, %v1722_v20  ;;  %594 = vperm.xlu1 %1385, %v1722_v20   ;;  %v545_v25 = vsub.f32 %v1714_v13, %v1725_v21  ;;  %1147 = vst.msk [vmem:[#allocation2 + $0x38] sm:$0xff] %vm19_vm2, %v1725_v21  ;;  %v636_v13 = vld [vmem:[#allocation3 + $0x10] sm:$0xff] }
 0x18c   :  { %v558_v42 = vmul.f32 1.442695, %v544_v24 }
 0x18e   :  { %599 = vperm.xlu1 %1385, %v1725_v21  }
 0x1f1   :  { %v565_v49 = vpop.permute.xlu0 %564 }
 0x1f2   :  { %v602_v54 = vsub.f32 %v1598_v56, %v565_v49 }
 0x1f4   :  { %v610_v60 = vmul.f32 1.442695, %v602_v54 }
 0x1f5   :  { %v570_v62 = vpop.permute.xlu1 %569 }
 0x1f6   :  { %1386 = vpow2.f32 %v610_v60  ;;  %v603_v63 = vsub.f32 %v1602_v58, %v570_v62 }
 0x1f8   :  { %v612_v1 = vmul.f32 1.442695, %v603_v63 }
 0x1f9   :  { %v575_v4 = vpop.permute.xlu1 %574 }
 0x1fa   :  { %1388 = vpow2.f32 %v612_v1  ;;  %v604_v6 = vsub.f32 %v1610_v5, %v575_v4 }
 0x1fc   :  { %v614_v10 = vmul.f32 1.442695, %v604_v6 }
 0x1fd   :  { %v580_v11 = vpop.permute.xlu1 %579 }
 0x1fe   :  { %1390 = vpow2.f32 %v614_v10  ;;  %v605_v14 = vsub.f32 %v1614_v7, %v580_v11 }
 0x200   :  { %v1387_v15 = vpop.eup %1386  ;;  %v616_v16 = vmul.f32 1.442695, %v605_v14 }
 0x201   :  { %v585_v18 = vpop.permute.xlu1 %584  ;;  %v626_v56 = vsel %vm1592_vm5, %v1387_v15, 0.0 }
 0x202   :  { %1392 = vpow2.f32 %v616_v16  ;;  %v606_v23 = vsub.f32 %v1622_v17, %v585_v18  ;;  %v650_v58 = vsel %vm36_vm0, %v626_v56, 0.0  ;;  %v747_v26 = vpack.c.bf16 %v626_v56, %v626_v56 }
 0x203   :  { %651 = vadd.xlane.f32.xlu1 %v650_v58 }
 0x204   :  { %v1389_v28 = vpop.eup %1388  ;;  %v618_v5 = vmul.f32 1.442695, %v606_v23  ;;  %1335 = vmatmul.mubr.msk.bf16.vlgmr.msra.gmra.mrb[16].mxu0 %vm36_vm0, %v747_v26 }
 0x205   :  { %v590_v29 = vpop.permute.xlu1 %589  ;;  %v627_v7 = vsel %vm1592_vm5, %v1389_v28, 0.0  ;;  %1345 = vmatpush3.bf16.msra.mxu0 %v852_v22  ;;  %1346 = vmatprep.mubr.msk.bf16.mxu0 %vm1435_vm1, %v1434_v0 }
 0x206   :  { %1394 = vpow2.f32 %v618_v5  ;;  %v607_v33 = vsub.f32 %v1626_v19, %v590_v29  ;;  %v653_v17 = vsel %vm36_vm0, %v627_v7, 0.0  ;;  %v748_v34 = vpack.c.bf16 %v627_v7, %v627_v7  ;;  %1356 = vmatprep.subr.bf16.mxu0 %v1434_v0 }
 0x207   :  { %654 = vadd.xlane.f32.xlu0 %v653_v17  ;;  %v552_v5 = vmul.f32 1.442695, %v541_v61 }
 0x208   :  { %v1391_v36 = vpop.eup %1390  ;;  %v620_v37 = vmul.f32 1.442695, %v607_v33  ;;  %1341 = vmatmul.mubr.msk.bf16.vlgmr.msra.gmra.mrb[16].mxu1 %vm36_vm0, %v748_v34  ;;  %v638_v34 = vld [vmem:[#allocation3 + $0x20] sm:$0xff] }
 0x209   :  { %v595_v39 = vpop.permute.xlu1 %594  ;;  %v628_v22 = vsel %vm1592_vm5, %v1391_v36, 0.0  ;;  %1351 = vmatpush3.bf16.msra.mxu1 %v898_v27  ;;  %1352 = vmatprep.mubr.msk.bf16.mxu1 %vm1435_vm1, %v1434_v0 }
 0x20a   :  { %1396 = vpow2.f32 %v620_v37  ;;  %v608_v19 = vsub.f32 %v1634_v30, %v595_v39  ;;  %v656_v41 = vsel %vm36_vm0, %v628_v22, 0.0  ;;  %v749_v49 = vpack.c.bf16 %v628_v22, %v628_v22  ;;  %1362 = vmatprep.subr.bf16.mxu1 %v1434_v0 }
 0x20b   :  { %657 = vadd.xlane.f32.xlu0 %v656_v41 }
 0x20c   :  { %v1393_v54 = vpop.eup %1392  ;;  %v622_v60 = vmul.f32 1.442695, %v608_v19  ;;  %1347 = vmatmul.mubr.msk.bf16.vlgmr.msra.gmra.mrb[20].mxu0 %vm36_vm0, %v749_v49  ;;  %v639_v19 = vld [vmem:[#allocation3 + $0x28] sm:$0xff] }
 0x20d   :  { %v600_v62 = vpop.permute.xlu1 %599  ;;  %v629_v27 = vsel %vm1592_vm5, %v1393_v54, 0.0  ;;  %1357 = vmatpush3.bf16.msra.mxu0 %v1746_v31  ;;  %1358 = vmatprep.mubr.msk.bf16.mxu0 %vm1435_vm1, %v1434_v0 }
 0x20e   :  { %1398 = vpow2.f32 %v622_v60  ;;  %v609_v30 = vsub.f32 %v1638_v32, %v600_v62  ;;  %v659_v63 = vsel %vm36_vm0, %v629_v27, 0.0  ;;  %v750_v1 = vpack.c.bf16 %v629_v27, %v629_v27  ;;  %1368 = vmatprep.subr.bf16.mxu0 %v1434_v0  ;;  %v640_v62 = vld [vmem:[#allocation3 + $0x30] sm:$0xff] }
 0x20f   :  { %660 = vadd.xlane.f32.xlu1 %v659_v63 }
 0x210   :  { %v1395_v4 = vpop.eup %1394  ;;  %v624_v6 = vmul.f32 1.442695, %v609_v30  ;;  %1353 = vmatmul.mubr.msk.bf16.vlgmr.msra.gmra.mrb[20].mxu1 %vm36_vm0, %v750_v1 }
 0x211   :  { %v630_v10 = vsel %vm1592_vm5, %v1395_v4, 0.0  ;;  %1363 = vmatpush3.bf16.msra.mxu1 %v1752_v35  ;;  %1364 = vmatprep.mubr.msk.bf16.mxu1 %vm1435_vm1, %v1434_v0  ;;  %v641_v4 = vld [vmem:[#allocation3 + $0x38] sm:$0xff] }
 0x212   :  { %1400 = vpow2.f32 %v624_v6  ;;  %v662_v32 = vsel %vm36_vm0, %v630_v10, 0.0  ;;  %v751_v31 = vpack.c.bf16 %v630_v10, %v630_v10  ;;  %1374 = vmatprep.subr.bf16.mxu1 %v1434_v0 }
 0x213   :  { %663 = vadd.xlane.f32.xlu0 %v662_v32 }
 0x214   :  { %v1397_v11 = vpop.eup %1396  ;;  %1359 = vmatmul.mubr.msk.bf16.vlgmr.msra.gmra.mrb[24].mxu0 %vm36_vm0, %v751_v31 }
 0x215   :  { %v631_v14 = vsel %vm1592_vm5, %v1397_v11, 0.0  ;;  %1369 = vmatpush3.bf16.msra.mxu0 %v1758_v38  ;;  %1370 = vmatprep.mubr.msk.bf16.mxu0 %vm1435_vm1, %v1434_v0 }
 0x216   :  { %v665_v35 = vsel %vm36_vm0, %v631_v14, 0.0  ;;  %v752_v15 = vpack.c.bf16 %v631_v14, %v631_v14 }
 0x217   :  { %666 = vadd.xlane.f32.xlu1 %v665_v35 }
 0x218   :  { %v1399_v16 = vpop.eup %1398  ;;  %1365 = vmatmul.mubr.msk.bf16.vlgmr.msra.gmra.mrb[24].mxu1 %vm36_vm0, %v752_v15 }
 0x219   :  { %v632_v18 = vsel %vm1592_vm5, %v1399_v16, 0.0  ;;  %1375 = vmatpush3.bf16.msra.mxu1 %v1764_v45  ;;  %1376 = vmatprep.mubr.msk.bf16.mxu1 %vm1435_vm1, %v1434_v0  ;;  %v548_v0 = vmul.f32 1.442695, %v539_v48  ;;  %v546_v45 = vmul.f32 1.442695, %v538_v44  ;;  %v691_v16 = vld [vmem:[#allocation4] sm:$0xff] }
 0x21a   :  { %v668_v38 = vsel %vm36_vm0, %v632_v18, 0.0  ;;  %v753_v56 = vpack.c.bf16 %v632_v18, %v632_v18  ;;  %v560_v44 = vmul.f32 1.442695, %v545_v25  ;;  %v637_v25 = vld [vmem:[#allocation3 + $0x18] sm:$0xff] }
 0x21b   :  { %669 = vadd.xlane.f32.xlu0 %v668_v38  ;;  %1402 = vpow2.f32 %v548_v0 }
 0x21c   :  { %v1401_v23 = vpop.eup %1400  ;;  %1371 = vmatmul.mubr.msk.bf16.vlgmr.msra.gmra.mrb[28].mxu0 %vm36_vm0, %v753_v56  ;;  %1404 = vpow2.f32 %v546_v45 }
 0x21d   :  { %v633_v58 = vsel %vm1592_vm5, %v1401_v23, 0.0  ;;  %1406 = vpow2.f32 %v550_v53  ;;  %v692_v23 = vld [vmem:[#allocation4 + $0x8] sm:$0xff] }
 0x21e   :  { %v671_v26 = vsel %vm36_vm0, %v633_v58, 0.0  ;;  %v754_v28 = vpack.c.bf16 %v633_v58, %v633_v58  ;;  %1408 = vpow2.f32 %v552_v5  ;;  %v693_v5 = vld [vmem:[#allocation4 + $0x10] sm:$0xff] }
 0x21f   :  { %672 = vadd.xlane.f32.xlu1 %v671_v26  ;;  %1410 = vpow2.f32 %v554_v43 }
 0x220   :  { %1377 = vmatmul.mubr.msk.bf16.vlgmr.msra.gmra.mrb[28].mxu1 %vm36_vm0, %v754_v28  ;;  %1412 = vpow2.f32 %v556_v40 }
 0x221   :  { %1414 = vpow2.f32 %v558_v42 }
 0x222   :  { %1416 = vpow2.f32 %v560_v44 }
 0x225   :  { %v1403_v46 = vpop.eup %1402 }
 0x226   :  { %v1405_v47 = vpop.eup %1404  ;;  %v643_v9 = vmul.f32 %v1403_v46, %v635_v3  ;;  %v695_v3 = vld [vmem:[#allocation4 + $0x20] sm:$0xff] }
 0x227   :  { %v1407_v48 = vpop.eup %1406  ;;  %v642_v61 = vmul.f32 %v1405_v47, %v634_v59 }
 0x228   :  { %v1409_v50 = vpop.eup %1408  ;;  %v644_v21 = vmul.f32 %v1407_v48, %v636_v13 }
 0x229   :  { %v1411_v51 = vpop.eup %1410  ;;  %v645_v33 = vmul.f32 %v1409_v50, %v637_v25  ;;  %v696_v25 = vld [vmem:[#allocation4 + $0x28] sm:$0xff] }
 0x22a   :  { %v1413_v52 = vpop.eup %1412  ;;  %v646_v39 = vmul.f32 %v1411_v51, %v638_v34 }
 0x22b   :  { %v1415_v55 = vpop.eup %1414  ;;  %v647_v54 = vmul.f32 %v1413_v52, %v639_v19 }
 0x22c   :  { %v1417_v57 = vpop.eup %1416  ;;  %v648_v63 = vmul.f32 %v1415_v55, %v640_v62 }
 0x22d   :  { %v649_v32 = vmul.f32 %v1417_v57, %v641_v4 }
 0x230   :  { %706 = vperm.xlu1 %1385, %v1403_v46  }
 0x231   :  { %701 = vperm.xlu0 %1384, %v1405_v47  }
 0x234   :  { %711 = vperm.xlu1 %1385, %v1407_v48  }
 0x235   :  { %716 = vperm.xlu0 %1384, %v1409_v50   ;;  %v694_v50 = vld [vmem:[#allocation4 + $0x18] sm:$0xff] }
 0x238   :  { %721 = vperm.xlu1 %1385, %v1411_v51  }
 0x239   :  { %726 = vperm.xlu0 %1384, %v1413_v52  }
 0x23c   :  { %731 = vperm.xlu1 %1385, %v1415_v55  }
 0x23d   :  { %736 = vperm.xlu0 %1384, %v1417_v57  }
 0x290   :  { %v652_v2 = vpop.xlane.xlu1 %651 }
 0x291   :  { %v674_v8 = vadd.f32 %v652_v2, %v642_v61 }
 0x293   :  { %683 = vst.msk [vmem:[#allocation3] sm:$0xff] %vm19_vm2, %v674_v8 }
 0x294   :  { %v655_v12 = vpop.xlane.xlu0 %654 }
 0x295   :  { %v675_v20 = vadd.f32 %v655_v12, %v643_v9 }
 0x297   :  { %684 = vst.msk [vmem:[#allocation3 + $0x8] sm:$0xff] %vm19_vm2, %v675_v20 }
 0x298   :  { %v658_v24 = vpop.xlane.xlu0 %657 }
 0x299   :  { %v676_v29 = vadd.f32 %v658_v24, %v644_v21 }
 0x29a   :  { %v1159_v7 = vld [vmem:[#allocation3] sm:$0xff] }
 0x29b   :  { %685 = vst.msk [vmem:[#allocation3 + $0x10] sm:$0xff] %vm19_vm2, %v676_v29  ;;  %1169 = vperm.xlu1 %1385, %v1159_v7  }
 0x29c   :  { %v661_v17 = vpop.xlane.xlu1 %660 }
 0x29d   :  { %v677_v36 = vadd.f32 %v661_v17, %v645_v33 }
 0x29e   :  { %v1160_v37 = vld [vmem:[#allocation3 + $0x8] sm:$0xff] }
 0x29f   :  { %686 = vst.msk [vmem:[#allocation3 + $0x18] sm:$0xff] %vm19_vm2, %v677_v36  ;;  %1174 = vperm.xlu0 %1384, %v1160_v37  }
 0x2a0   :  { %v664_v22 = vpop.xlane.xlu0 %663 }
 0x2a1   :  { %v678_v41 = vadd.f32 %v664_v22, %v646_v39  ;;  %v697_v39 = vld [vmem:[#allocation4 + $0x30] sm:$0xff] }
 0x2a2   :  { %v1161_v49 = vld [vmem:[#allocation3 + $0x10] sm:$0xff] }
 0x2a3   :  { %687 = vst.msk [vmem:[#allocation3 + $0x20] sm:$0xff] %vm19_vm2, %v678_v41  ;;  %1179 = vperm.xlu1 %1385, %v1161_v49  }
 0x2a4   :  { %v667_v60 = vpop.xlane.xlu1 %666 }
 0x2a5   :  { %v679_v27 = vadd.f32 %v667_v60, %v647_v54 }
 0x2a6   :  { %v1162_v30 = vld [vmem:[#allocation3 + $0x18] sm:$0xff] }
 0x2a7   :  { %688 = vst.msk [vmem:[#allocation3 + $0x28] sm:$0xff] %vm19_vm2, %v679_v27  ;;  %1184 = vperm.xlu0 %1384, %v1162_v30   ;;  %v698_v27 = vld [vmem:[#allocation4 + $0x38] sm:$0xff] }
 0x2a8   :  { %v670_v1 = vpop.xlane.xlu0 %669 }
 0x2a9   :  { %v680_v6 = vadd.f32 %v670_v1, %v648_v63 }
 0x2aa   :  { %v1163_v10 = vld [vmem:[#allocation3 + $0x20] sm:$0xff] }
 0x2ab   :  { %689 = vst.msk [vmem:[#allocation3 + $0x30] sm:$0xff] %vm19_vm2, %v680_v6  ;;  %1189 = vperm.xlu1 %1385, %v1163_v10  }
 0x2ac   :  { %v673_v31 = vpop.xlane.xlu1 %672 }
 0x2ad   :  { %v681_v11 = vadd.f32 %v673_v31, %v649_v32 }
 0x2ae   :  { %v1164_v14 = vld [vmem:[#allocation3 + $0x28] sm:$0xff] }
 0x2af   :  { %690 = vst.msk [vmem:[#allocation3 + $0x38] sm:$0xff] %vm19_vm2, %v681_v11  ;;  %1194 = vperm.xlu0 %1384, %v1164_v14  }
 0x2b0   :  { %v702_v18 = vpop.permute.xlu0 %701  ;;  %v707_v38 = vpop.permute.xlu1 %706 }
 0x2b1   :  { %v739_v56 = vmul.f32 %v702_v18, %v691_v16  ;;  %v740_v45 = vmul.f32 %v707_v38, %v692_v23 }
 0x2b2   :  { %v1165_v35 = vld [vmem:[#allocation3 + $0x30] sm:$0xff] }
 0x2b3   :  { %1199 = vperm.xlu1 %1385, %v1165_v35  }
 0x2b4   :  { %v712_v43 = vpop.permute.xlu1 %711  ;;  %v717_v51 = vpop.permute.xlu0 %716 }
 0x2b5   :  { %v741_v47 = vmul.f32 %v712_v43, %v693_v5  ;;  %v742_v61 = vmul.f32 %v717_v51, %v694_v50 }
 0x2b6   :  { %v1166_v15 = vld [vmem:[#allocation3 + $0x38] sm:$0xff] }
 0x2b7   :  { %1204 = vperm.xlu0 %1384, %v1166_v15  }
 0x2b8   :  { %v722_v8 = vpop.permute.xlu1 %721  ;;  %v727_v29 = vpop.permute.xlu0 %726 }
 0x2b9   :  { %v743_v21 = vmul.f32 %v722_v8, %v695_v3  ;;  %v744_v36 = vmul.f32 %v727_v29, %v696_v25 }
 0x2bc   :  { %v732_v22 = vpop.permute.xlu1 %731  ;;  %v737_v30 = vpop.permute.xlu0 %736 }
 0x2bd   :  { %v745_v60 = vmul.f32 %v732_v22, %v697_v39  ;;  %v746_v10 = vmul.f32 %v737_v30, %v698_v27 }
 0x2d7   :  { %v796_v58 = vpop.f32.mrb[16].mxu0 }
 0x2d8   :  { %v1124_v26 = vadd.f32 %v796_v58, %v739_v56  ;;  %v1336_v28 = vpop.f32.mrb[17].mxu0 }
 0x2d9   :  { %v799_v0 = vpop.f32.mrb[18].mxu0 }
 0x2da   :  { %1132 = vst.msk [vmem:[#allocation4] sm:$0xff] %vm36_vm0, %v1124_v26  ;;  %v1337_v53 = vpop.f32.mrb[19].mxu0 }
 0x2db   :  { %v842_v40 = vpop.f32.mrb[16].mxu1 }
 0x2dc   :  { %v1125_v42 = vadd.f32 %v842_v40, %v740_v45  ;;  %v1342_v44 = vpop.f32.mrb[17].mxu1 }
 0x2dd   :  { %v845_v46 = vpop.f32.mrb[18].mxu1 }
 0x2de   :  { %1133 = vst.msk [vmem:[#allocation4 + $0x8] sm:$0xff] %vm36_vm0, %v1125_v42  ;;  %v1343_v48 = vpop.f32.mrb[19].mxu1 }
 0x2df   :  { %v888_v52 = vpop.f32.mrb[20].mxu0 }
 0x2e0   :  { %v1126_v55 = vadd.f32 %v888_v52, %v741_v47  ;;  %v1348_v57 = vpop.f32.mrb[21].mxu0 }
 0x2e1   :  { %v891_v59 = vpop.f32.mrb[22].mxu0  ;;  %v1151_v23 = vld [vmem:[#allocation4] sm:$0xff] }
 0x2e2   :  { %1134 = vst.msk [vmem:[#allocation4 + $0x10] sm:$0xff] %vm36_vm0, %v1126_v55  ;;  %v1349_v2 = vpop.f32.mrb[23].mxu0 }
 0x2e3   :  { %v934_v9 = vpop.f32.mrb[20].mxu1 }
 0x2e4   :  { %v1127_v12 = vadd.f32 %v934_v9, %v742_v61  ;;  %v1354_v13 = vpop.f32.mrb[21].mxu1 }
 0x2e5   :  { %v937_v20 = vpop.f32.mrb[22].mxu1  ;;  %v1152_v0 = vld [vmem:[#allocation4 + $0x8] sm:$0xff] }
 0x2e6   :  { %1135 = vst.msk [vmem:[#allocation4 + $0x18] sm:$0xff] %vm36_vm0, %v1127_v12  ;;  %v1355_v24 = vpop.f32.mrb[23].mxu1 }
 0x2e7   :  { %v980_v7 = vpop.f32.mrb[24].mxu0 }
 0x2e8   :  { %v1128_v33 = vadd.f32 %v980_v7, %v743_v21  ;;  %v1360_v17 = vpop.f32.mrb[25].mxu0 }
 0x2e9   :  { %v983_v34 = vpop.f32.mrb[26].mxu0  ;;  %v1153_v43 = vld [vmem:[#allocation4 + $0x10] sm:$0xff] }
 0x2ea   :  { %1136 = vst.msk [vmem:[#allocation4 + $0x20] sm:$0xff] %vm36_vm0, %v1128_v33  ;;  %v1361_v37 = vpop.f32.mrb[27].mxu0 }
 0x2eb   :  { %v1026_v19 = vpop.f32.mrb[24].mxu1 }
 0x2ec   :  { %v1129_v41 = vadd.f32 %v1026_v19, %v744_v36  ;;  %v1366_v49 = vpop.f32.mrb[25].mxu1 }
 0x2ed   :  { %v1029_v54 = vpop.f32.mrb[26].mxu1  ;;  %v1154_v46 = vld [vmem:[#allocation4 + $0x18] sm:$0xff] }
 0x2ee   :  { %1137 = vst.msk [vmem:[#allocation4 + $0x28] sm:$0xff] %vm36_vm0, %v1129_v41  ;;  %v1367_v62 = vpop.f32.mrb[27].mxu1 }
 0x2ef   :  { %v1072_v63 = vpop.f32.mrb[28].mxu0 }
 0x2f0   :  { %v1130_v1 = vadd.f32 %v1072_v63, %v745_v60  ;;  %v1372_v4 = vpop.f32.mrb[29].mxu0 }
 0x2f1   :  { %v1075_v6 = vpop.f32.mrb[30].mxu0  ;;  %v1155_v51 = vld [vmem:[#allocation4 + $0x20] sm:$0xff] }
 0x2f2   :  { %1138 = vst.msk [vmem:[#allocation4 + $0x30] sm:$0xff] %vm36_vm0, %v1130_v1  ;;  %v1373_v32 = vpop.f32.mrb[31].mxu0 }
 0x2f3   :  { %v1118_v31 = vpop.f32.mrb[28].mxu1 }
 0x2f4   :  { %v1131_v11 = vadd.f32 %v1118_v31, %v746_v10  ;;  %v1378_v14 = vpop.f32.mrb[29].mxu1 }
 0x2f5   :  { %v1121_v35 = vpop.f32.mrb[30].mxu1  ;;  %v1156_v59 = vld [vmem:[#allocation4 + $0x28] sm:$0xff] }
 0x2f6   :  { %1139 = vst.msk [vmem:[#allocation4 + $0x38] sm:$0xff] %vm36_vm0, %v1131_v11  ;;  %v1379_v15 = vpop.f32.mrb[31].mxu1 }
 0x2f9   :  { %v1157_v3 = vld [vmem:[#allocation4 + $0x30] sm:$0xff] }
 0x2fd   :  { %v1158_v12 = vld [vmem:[#allocation4 + $0x38] sm:$0xff] }
 0x31a   :  { %v1170_v16 = vpop.permute.xlu1 %1169 }
 0x31b   :  { %1418 = vrcp.f32 %v1170_v16 }
 0x31e   :  { %v1175_v18 = vpop.permute.xlu0 %1174 }
 0x31f   :  { %1420 = vrcp.f32 %v1175_v18 }
 0x322   :  { %v1180_v38 = vpop.permute.xlu1 %1179 }
 0x323   :  { %1422 = vrcp.f32 %v1180_v38 }
 0x325   :  { %v1419_v56 = vpop.eup %1418 }
 0x326   :  { %v1208_v58 = vmul.f32 %v1419_v56, %v1151_v23  ;;  %v1185_v26 = vpop.permute.xlu0 %1184 }
 0x327   :  { %1424 = vrcp.f32 %v1185_v26 }
 0x328   :  { %1224 = vst.msk [vmem:[%s1901_s3] sm:$0xff] %vm36_vm0, %v1208_v58 }
 0x329   :  { %v1421_v28 = vpop.eup %1420 }
 0x32a   :  { %v1210_v45 = vmul.f32 %v1421_v28, %v1152_v0  ;;  %v1190_v53 = vpop.permute.xlu1 %1189 }
 0x32b   :  { %1426 = vrcp.f32 %v1190_v53 }
 0x32c   :  { %1225 = vst.msk [vmem:[%s1901_s3 + $0x8] sm:$0xff] %vm36_vm0, %v1210_v45 }
 0x32d   :  { %v1423_v5 = vpop.eup %1422 }
 0x32e   :  { %v1212_v40 = vmul.f32 %v1423_v5, %v1153_v43  ;;  %v1195_v42 = vpop.permute.xlu0 %1194 }
 0x32f   :  { %1428 = vrcp.f32 %v1195_v42 }
 0x330   :  { %1226 = vst.msk [vmem:[%s1901_s3 + $0x10] sm:$0xff] %vm36_vm0, %v1212_v40 }
 0x331   :  { %v1425_v44 = vpop.eup %1424 }
 0x332   :  { %v1214_v47 = vmul.f32 %v1425_v44, %v1154_v46  ;;  %v1200_v48 = vpop.permute.xlu1 %1199 }
 0x333   :  { %1430 = vrcp.f32 %v1200_v48 }
 0x334   :  { %1227 = vst.msk [vmem:[%s1901_s3 + $0x18] sm:$0xff] %vm36_vm0, %v1214_v47 }
 0x335   :  { %v1427_v50 = vpop.eup %1426 }
 0x336   :  { %v1216_v52 = vmul.f32 %v1427_v50, %v1155_v51  ;;  %v1205_v55 = vpop.permute.xlu0 %1204 }
 0x337   :  { %1432 = vrcp.f32 %v1205_v55 }
 0x338   :  { %1228 = vst.msk [vmem:[%s1901_s3 + $0x20] sm:$0xff] %vm36_vm0, %v1216_v52 }
 0x339   :  { %v1429_v57 = vpop.eup %1428 }
 0x33a   :  { %v1218_v61 = vmul.f32 %v1429_v57, %v1156_v59 }
 0x33c   :  { %1229 = vst.msk [vmem:[%s1901_s3 + $0x28] sm:$0xff] %vm36_vm0, %v1218_v61 }
 0x33d   :  { %v1431_v2 = vpop.eup %1430 }
 0x33e   :  { %v1220_v8 = vmul.f32 %v1431_v2, %v1157_v3 }
 0x340   :  { %1230 = vst.msk [vmem:[%s1901_s3 + $0x30] sm:$0xff] %vm36_vm0, %v1220_v8 }
 0x341   :  { %v1433_v9 = vpop.eup %1432 }
 0x342   :  { %v1222_v13 = vmul.f32 %v1433_v9, %v1158_v12 }
 0x344   :  { %1231 = vst.msk [vmem:[%s1901_s3 + $0x38] sm:$0xff] %vm36_vm0, %v1222_v13 }

// kernel: transformer_model.17
= control target key start
LH: loop header
LB: loop body
LE: loop exit
PB: predicated region body
PF: predicated region fallthrough
CT: control target
= control target key end

     0   :  { %v137_v3 = vmov 0.0   ;;  %vm138_vm0 = vmmov 0   ;;  %s195_s0 = inlined_call_operand.vmem [shape: f32[16,32], index: 0, kind: input, shape index: {}]   ;;  %s196_s1 = inlined_call_operand.vmem [shape: f32[32,128], index: 1, kind: input, shape index: {}]   ;;  %s197_s2 = inlined_call_operand.vmem [shape: f32[1,128], index: 2, kind: input, shape index: {}]   ;;  %s198_s3 = inlined_call_operand.hbm [shape: f32[16,128], index: 3, kind: output, shape index: {}]  }
   0x1   :  { %v19_v0 = vld [vmem:[%s196_s1] sm:$0xff]  ;;  %v20_v1 = vld [vmem:[%s196_s1 + $0x8] sm:$0xff]  ;;  %v21_v2 = vld [vmem:[%s196_s1 + $0x10] sm:$0xff]  ;;  %100 = vmatprep.subr.bf16.mxu0 %v137_v3  ;;  %104 = vmatprep.mubr.msk.bf16.mxu0 %vm138_vm0, %v137_v3 }
   0x2   :  { %v23_v4 = vpack.c.bf16 %v20_v1, %v19_v0  ;;  %v22_v5 = vld [vmem:[%s196_s1 + $0x18] sm:$0xff] }
   0x3   :  { %8 = vsyncpa [#allocation3], 0  ;;  %v24_v6 = vpack.c.bf16 %v22_v5, %v21_v2  ;;  %v16_v7 = vld [vmem:[%s195_s0] sm:$0xff]  ;;  %v17_v8 = vld [vmem:[%s195_s0 + $0x8] sm:$0xff]  ;;  %vm32_vm1 = vcmask 261120   ;;  %s139_s25 = smov [#allocation2]  }
   0x4   :  { %101 = vmatpush3.bf16.msra.mxu0 %v23_v4  ;;  %v18_v9 = vpack.c.bf16 %v17_v8, %v16_v7  ;;  %v95_v10 = vld [vmem:[%s197_s2] ss:$0 sm:$0xff]  ;;  %s84_s26 = sshll.u32 %s139_s25, 4  ;;  %s85_s26 = int_to_ptr.vmem [resolvable:$true] %s84_s26 }
   0x5   :  { %102 = vmatprep.subr.bf16.mxu0 %v137_v3  ;;  %s113_s0 = scalar_lea.vmem %s85_s26, 256  ;;  %p118_p1 = scmp.lt.s32.totalorder %s85_s26, %s85_s26 }
   0x6   :  { %p114_p0 = scmp.ne.s32.totalorder %s85_s26, %s113_s0  ;;  %p119_p2 = scmp.lt.s32.totalorder %s113_s0, %s113_s0 }
   0x8   :  { %103 = vmatpush3.bf16.msra.mxu0 %v24_v6  ;;  %p120_p3 = por %p119_p2, %p118_p1 }
   0xa   :  { %p121_p4 = pnand %p120_p3, %p114_p0 }
   0xb   :  { %105 = vmatmul.mubr.msk.bf16.vlgmr.msra.gmra.mrb[0].mxu0 %vm32_vm1, %v18_v9 }
  0xde   :  { %v70_v11 = vpop.f32.mrb[0].mxu0 }
  0xdf   :  { %v71_v12 = vadd.f32 %v95_v10, %v70_v11  ;;  %v106_v13 = vpop.f32.mrb[1].mxu0 }
  0xe0   :  { %v73_v14 = vpop.f32.mrb[2].mxu0 }
  0xe1   :  { %77 = vst [vmem:[#allocation2] sm:$0xff] %v71_v12  ;;  %v74_v15 = vadd.f32 %v95_v10, %v73_v14  ;;  %v107_v16 = vpop.f32.mrb[3].mxu0 }
  0xe3   :  { %78 = vst [vmem:[#allocation2 + $0x8] sm:$0xff] %v74_v15 }
  0xe4   :  { %124 = shalt.err (!%p121_p4)
}
  0xe5   :  { %s125_s28 = scalar_lea.hbm %s198_s3, 256 }
  0xe6   :  { %p126_p5 = scmp.ne.s32.totalorder %s198_s3, %s125_s28  ;;  %p129_p6 = scmp.lt.u32.totalorder %s125_s28, %s198_s3 }
  0xe8   :  { %p131_p7 = pnand %p129_p6, %p126_p5 }
  0xea   :  { %134 = shalt.err (!%p131_p7)
}
  0xeb   :  { %s140_s6 = smov 128   ;;  %s141_s7 = smov 8  }
  0xec   :  { %90 = dma.vmem_to_hbm [thread:$0]  %s85_s26, 256, %s198_s3, [#allocation3], %s140_s6, %s140_s6, %s141_s7  }
  0xed   :  { %135 = dma.done.wait [#allocation3], 256  }
  0xee   :  { %136 = vsyncadd [#allocation3], 4294967040 }
  0xef   :  { %94 = vsyncpa [#allocation3], 1 }

</bundles_post_ra>
